<compile_context>
chip_gen: v6e
topology: v6e:2x2x1
jax: 0.10.0
libtpu: 0.0.40
codegen_flags: <defaults>
</compile_context>

<pallas_src>
import functools

import jax
import jax.numpy as jnp
import numpy as np
from jax import lax
from jax.experimental import pallas as pl
from jax.experimental.pallas import tpu as pltpu


def text_encoder_top_kernel(x_ref, wih_ref, bih_ref, whh_ref, bhh_ref,
                            w1_ref, b1_ref, w2_ref, b2_ref,
                            out_ref,
                            gi_ref, rnn_ref,
                            *, approx_recip, unroll):
    # x_ref: [1, T, TB, F]   wih: [F, 3H]  bih: [1, 3H]  whh: [H, 3H]  bhh: [1, 3H]
    # w1: [H, A]  b1: [1, A]  w2: [1, A]  b2: [1, 1]   out_ref: [TB, H]
    # scratch: gi_ref [T, TB, 3H] f32, rnn_ref [T, TB, H] f32
    _, T, TB, F = x_ref.shape
    H = out_ref.shape[1]

    # ---- prologue: single fused, T-parallel input projection (off the
    #      recurrence critical path).  Operands may be bf16; accumulate fp32.
    x_flat = x_ref[0].reshape(T * TB, F)
    gi_ref[...] = (jnp.dot(x_flat, wih_ref[...], preferred_element_type=jnp.float32)
                   + bih_ref[...]).reshape(T, TB, 3 * H)

    # Hoist weight load and bias broadcast out of the serial loop.
    whh = whh_ref[...]
    bhh = jnp.broadcast_to(bhh_ref[...], (TB, 3 * H))

    def gru_step(t, h):
        # Single fused h-matmul per step keeps MXU issues on the serial chain
        # to 1 (RHS [H,3H] stays resident across steps).
        gh = jnp.dot(h, whh, preferred_element_type=jnp.float32) + bhh   # [TB, 3H]
        gi = gi_ref[t]                                                   # [TB, 3H]
        r = jax.nn.sigmoid(gi[:, :H] + gh[:, :H])
        z = jax.nn.sigmoid(gi[:, H:2 * H] + gh[:, H:2 * H])
        n = jnp.tanh(gi[:, 2 * H:] + r * gh[:, 2 * H:])                  # b_hn inside r-gate
        h_new = (1.0 - z) * n + z * h                                    # [TB, H]
        rnn_ref[t] = h_new
        return h_new

    h0 = jnp.zeros((TB, H), dtype=jnp.float32)
    lax.fori_loop(0, T, gru_step, h0, unroll=unroll)

    # ---- epilogue: batched self-attention pooling + L2 normalize.
    rnn = rnn_ref[...]                                                   # [T, TB, H]
    rnn_flat = rnn.reshape(T * TB, H)
    u = jnp.tanh(jnp.dot(rnn_flat.astype(w1_ref.dtype), w1_ref[...],
                         preferred_element_type=jnp.float32)
                 + b1_ref[...])                                          # [T*TB, A]
    # [*, A] x [A, 1] replaced by VPU multiply + lane reduction.
    scores = (jnp.sum(u * w2_ref[...], axis=-1, keepdims=True)
              + b2_ref[...]).reshape(T, TB, 1)

    m = jnp.max(scores, axis=0, keepdims=True)
    e = jnp.exp(scores - m)
    denom = jnp.sum(e, axis=0, keepdims=True)
    if approx_recip:
        alpha = e * pl.reciprocal(denom, approx=True)      # EUP slot, off VPU path
    else:
        alpha = e / denom
    pooled = jnp.sum(alpha * rnn, axis=0)                                # [TB, H]
    ss = jnp.sum(pooled * pooled, axis=1, keepdims=True)
    out_ref[...] = pooled * lax.rsqrt(jnp.maximum(ss, 1e-24))            # F.normalize(p=2)


def _round_up(n, m):
    return ((n + m - 1) // m) * m


def _choose_tb(B, T, F, H, x_bytes, budget_bytes=24 << 20):
    """Largest power-of-two batch tile (8..256) fitting the VMEM budget and
    leaving >= 2 grid tiles when B is large enough (v7x: 2 TensorCores)."""
    def tile_bytes(tb):
        return (2 * T * tb * F * x_bytes        # double-buffered x tile
                + T * tb * 3 * H * 4            # fused gate scratch
                + T * tb * H * 4                # rnn trajectory scratch
                + 2 * tb * H * 4)               # double-buffered output tile
    b8 = max(8, _round_up(B, 8))
    tb = 256
    while tb > 8 and (tile_bytes(tb) > budget_bytes or b8 < 2 * tb):
        tb //= 2
    return tb


def text_encoder_top(x, params, *, use_bf16=True):
    B, T, F = x.shape
    H = params["w_hh_T"].shape[0]
    A = params["w1_T"].shape[1]

    x_dtype = jnp.bfloat16 if use_bf16 else jnp.float32
    w_dtype = jnp.bfloat16 if use_bf16 else jnp.float32
    x_bytes = 2 if use_bf16 else 4

    TB = _choose_tb(B, T, F, H, x_bytes)
    B_pad = _round_up(max(B, TB), TB)
    n_tiles = B_pad // TB

    # Tile-major, contiguous per-tile x layout: [n_tiles, T, TB, F].
    x_p = jnp.pad(x.astype(x_dtype), ((0, B_pad - B), (0, 0), (0, 0)))
    x_tiles = jnp.transpose(x_p.reshape(n_tiles, TB, T, F), (0, 2, 1, 3))

    w_ih = params["w_ih_T"].astype(w_dtype)            # [F, 3H]
    w_hh = params["w_hh_T"].astype(jnp.float32)        # [H, 3H] (recurrence stays fp32)
    b_ih = params["b_ih"].astype(jnp.float32)          # [1, 3H]
    b_hh = params["b_hh"].astype(jnp.float32)          # [1, 3H]
    w1 = params["w1_T"].astype(w_dtype)                # [H, A]
    b1 = params["b1"].astype(jnp.float32)              # [1, A]
    w2 = params["w2"].astype(jnp.float32)              # [1, A]
    b2 = params["b2"].astype(jnp.float32)              # [1, 1]

    args = (x_tiles, w_ih, b_ih, w_hh, b_hh, w1, b1, w2, b2)

    in_specs = [pl.BlockSpec((1, T, TB, F), lambda b: (b, 0, 0, 0))]
    in_specs += [pl.BlockSpec(a.shape, lambda b: (0, 0)) for a in args[1:]]

    # Explicit VMEM budget (generation-agnostic, v7x-safe 64 MiB ceiling).
    est = (2 * T * TB * F * x_bytes
           + T * TB * 3 * H * 4 + T * TB * H * 4
           + 2 * TB * H * 4
           + (F * 3 * H + H * A) * (2 if use_bf16 else 4)
           + (H * 3 * H + 6 * H + 2 * A + 1) * 4)
    vmem_limit = int(min(max(3 * est, 32 << 20), 64 << 20))

    unroll = True if T <= 16 else 8   # cap unroll for long recurrences (vreg pressure)

    kernel = functools.partial(text_encoder_top_kernel,
                               approx_recip=use_bf16, unroll=unroll)

    out = pl.pallas_call(
        kernel,
        out_shape=jax.ShapeDtypeStruct((B_pad, H), jnp.float32),
        grid=(n_tiles,),
        in_specs=in_specs,
        out_specs=pl.BlockSpec((TB, H), lambda b: (b, 0)),
        scratch_shapes=[pltpu.VMEM((T, TB, 3 * H), jnp.float32),
                        pltpu.VMEM((T, TB, H), jnp.float32)],
        compiler_params=pltpu.CompilerParams(
            dimension_semantics=("parallel",),
            vmem_limit_bytes=vmem_limit),
    )(*args)
    return out[:B]


def reference(x, params):
    # Pure-JAX reference mirroring the PyTorch forward (depth=1, dropout_p=0).
    H = params["w_hh_T"].shape[0]
    x_tm = jnp.transpose(x, (1, 0, 2)).astype(jnp.float32)

    def step(h, x_t):
        gi = x_t @ params["w_ih_T"] + params["b_ih"][0]
        gh = h @ params["w_hh_T"] + params["b_hh"][0]
        r = jax.nn.sigmoid(gi[:, :H] + gh[:, :H])
        z = jax.nn.sigmoid(gi[:, H:2 * H] + gh[:, H:2 * H])
        n = jnp.tanh(gi[:, 2 * H:] + r * gh[:, 2 * H:])
        h_new = (1.0 - z) * n + z * h
        return h_new, h_new

    h0 = jnp.zeros((x.shape[0], H), jnp.float32)
    _, rnn = lax.scan(step, h0, x_tm)                        # [T, B, H]
    u = jnp.tanh(rnn @ params["w1_T"] + params["b1"][0])
    scores = u @ params["w2"].T + params["b2"][0, 0]         # [T, B, 1]
    alpha = jax.nn.softmax(scores, axis=0)
    pooled = jnp.sum(alpha * rnn, axis=0)
    norm = jnp.sqrt(jnp.sum(pooled * pooled, axis=1, keepdims=True))
    return pooled / jnp.maximum(norm, 1e-12)


def init_params(key, size_feature, size, size_attn):
    H, F, A = size, size_feature, size_attn
    ks = jax.random.split(key, 8)
    s_gru = 1.0 / np.sqrt(H)
    s_a1 = 1.0 / np.sqrt(H)
    s_a2 = 1.0 / np.sqrt(A)
    u = lambda k, shp, s: jax.random.uniform(k, shp, jnp.float32, -s, s)
    return dict(
        w_ih_T=u(ks[0], (F, 3 * H), s_gru),   # = weight_ih_l0.T
        w_hh_T=u(ks[1], (H, 3 * H), s_gru),   # = weight_hh_l0.T
        b_ih=u(ks[2], (1, 3 * H), s_gru),
        b_hh=u(ks[3], (1, 3 * H), s_gru),
        w1_T=u(ks[4], (H, A), s_a1),          # attention hidden Linear(H -> A)
        b1=u(ks[5], (1, A), s_a1),
        w2=u(ks[6], (1, A), s_a2),            # attention out Linear(A -> 1)
        b2=u(ks[7], (1, 1), s_a2),
    )


if __name__ == "__main__":
    size_feature, size, size_attn = 32, 32, 64
    T = 8

    key = jax.random.PRNGKey(0)
    k_x, k_x2, k_p = jax.random.split(key, 3)
    params = init_params(k_p, size_feature, size, size_attn)

    # Small case (B=2): single tile.
    x = jax.random.normal(k_x, (2, T, size_feature), dtype=jnp.float32)
    ref = jax.block_until_ready(reference(x, params))

    out_f32 = jax.block_until_ready(text_encoder_top(x, params, use_bf16=False))
    assert out_f32.shape == (2, size)
    np.testing.assert_allclose(np.asarray(out_f32), np.asarray(ref), rtol=1e-5, atol=1e-5)

    out_bf16 = jax.block_until_ready(text_encoder_top(x, params, use_bf16=True))
    np.testing.assert_allclose(np.asarray(out_bf16), np.asarray(ref), rtol=5e-2, atol=5e-2)

    # Multi-tile case (B=20 -> padded, grid > 1) exercising tiling / index maps.
    x2 = jax.random.normal(k_x2, (20, T, size_feature), dtype=jnp.float32)
    ref2 = jax.block_until_ready(reference(x2, params))
    out2 = jax.block_until_ready(text_encoder_top(x2, params, use_bf16=False))
    np.testing.assert_allclose(np.asarray(out2), np.asarray(ref2), rtol=1e-5, atol=1e-5)

    print("KERNEL_OK")
</pallas_src>

<mosaic_0001>
module attributes {stable_mosaic.version = 11 : i64} {
  func.func @text_encoder_top_kernel(%arg0: i32, %arg1: memref<1x8x8x32xf32, #tpu.memory_space<vmem>>, %arg2: memref<32x96xf32, #tpu.memory_space<vmem>>, %arg3: memref<1x96xf32, #tpu.memory_space<vmem>>, %arg4: memref<32x96xf32, #tpu.memory_space<vmem>>, %arg5: memref<1x96xf32, #tpu.memory_space<vmem>>, %arg6: memref<32x64xf32, #tpu.memory_space<vmem>>, %arg7: memref<1x64xf32, #tpu.memory_space<vmem>>, %arg8: memref<1x64xf32, #tpu.memory_space<vmem>>, %arg9: memref<1x1xf32, #tpu.memory_space<vmem>>, %arg10: memref<8x32xf32, #tpu.memory_space<vmem>>, %arg11: memref<8x8x96xf32, #tpu.memory_space<vmem>>, %arg12: memref<8x8x32xf32, #tpu.memory_space<vmem>>) attributes {dimension_semantics = [#tpu.dimension_semantics<parallel>], iteration_bounds = array<i64: 1>, scalar_prefetch = 0 : i64, scratch_operands = 2 : i64, tpu.core_type = #tpu.core_type<tc>, window_params = [{transform_indices = @transform_0, window_bounds = array<i64: 1, 8, 8, 32>}, {pipeline_mode = #tpu.pipeline_mode<synchronous>, transform_indices = @transform_1, window_bounds = array<i64: 32, 96>}, {pipeline_mode = #tpu.pipeline_mode<synchronous>, transform_indices = @transform_2, window_bounds = array<i64: 1, 96>}, {pipeline_mode = #tpu.pipeline_mode<synchronous>, transform_indices = @transform_3, window_bounds = array<i64: 32, 96>}, {pipeline_mode = #tpu.pipeline_mode<synchronous>, transform_indices = @transform_4, window_bounds = array<i64: 1, 96>}, {pipeline_mode = #tpu.pipeline_mode<synchronous>, transform_indices = @transform_5, window_bounds = array<i64: 32, 64>}, {pipeline_mode = #tpu.pipeline_mode<synchronous>, transform_indices = @transform_6, window_bounds = array<i64: 1, 64>}, {pipeline_mode = #tpu.pipeline_mode<synchronous>, transform_indices = @transform_7, window_bounds = array<i64: 1, 64>}, {pipeline_mode = #tpu.pipeline_mode<synchronous>, transform_indices = @transform_8, window_bounds = array<i64: 1, 1>}, {transform_indices = @transform_9, window_bounds = array<i64: 8, 32>}]} {
    %c0 = arith.constant 0 : index
    %c0_0 = arith.constant 0 : index
    %c0_1 = arith.constant 0 : index
    %c0_2 = arith.constant 0 : index
    %0 = vector.load %arg1[%c0, %c0_0, %c0_1, %c0_2] : memref<1x8x8x32xf32, #tpu.memory_space<vmem>>, vector<1x8x8x32xf32>
    %1 = vector.shape_cast %0 : vector<1x8x8x32xf32> to vector<8x8x32xf32>
    %2 = vector.shape_cast %1 : vector<8x8x32xf32> to vector<64x32xf32>
    %c0_3 = arith.constant 0 : index
    %c0_4 = arith.constant 0 : index
    %3 = vector.load %arg2[%c0_3, %c0_4] : memref<32x96xf32, #tpu.memory_space<vmem>>, vector<32x96xf32>
    %cst = arith.constant dense<0.000000e+00> : vector<64x96xf32>
    %4 = tpu.matmul %2, %3, %cst {dimension_numbers = #tpu.dot_dimension_numbers<[1], [0], [0], [1], [0, 0, 1, 1], [], []>} : vector<64x32xf32>, vector<32x96xf32>, vector<64x96xf32> -> vector<64x96xf32>
    %c0_5 = arith.constant 0 : index
    %c0_6 = arith.constant 0 : index
    %5 = vector.load %arg3[%c0_5, %c0_6] : memref<1x96xf32, #tpu.memory_space<vmem>>, vector<1x96xf32>
    %6 = vector.broadcast %5 : vector<1x96xf32> to vector<64x96xf32>
    %7 = arith.addf %4, %6 : vector<64x96xf32>
    %8 = vector.shape_cast %7 : vector<64x96xf32> to vector<8x8x96xf32>
    %c0_7 = arith.constant 0 : index
    %c0_8 = arith.constant 0 : index
    %c0_9 = arith.constant 0 : index
    %9 = vector.load %arg11[%c0_7, %c0_8, %c0_9] : memref<8x8x96xf32, #tpu.memory_space<vmem>>, vector<8x8x96xf32>
    tpu.vector_store %arg11[%c0_7, %c0_8, %c0_9], %8 {strides = array<i32>} : memref<8x8x96xf32, #tpu.memory_space<vmem>>, vector<8x8x96xf32>,
    %c0_10 = arith.constant 0 : index
    %c0_11 = arith.constant 0 : index
    %10 = vector.load %arg4[%c0_10, %c0_11] : memref<32x96xf32, #tpu.memory_space<vmem>>, vector<32x96xf32>
    %c0_12 = arith.constant 0 : index
    %c0_13 = arith.constant 0 : index
    %11 = vector.load %arg5[%c0_12, %c0_13] : memref<1x96xf32, #tpu.memory_space<vmem>>, vector<1x96xf32>
    %12 = vector.shape_cast %11 : vector<1x96xf32> to vector<1x96xf32>
    %13 = vector.broadcast %12 : vector<1x96xf32> to vector<8x96xf32>
    %cst_14 = arith.constant 0.000000e+00 : f32
    %14 = vector.broadcast %cst_14 : f32 to vector<8x32xf32>
    %c0_i32 = arith.constant 0 : i32
    %cst_15 = arith.constant dense<0.000000e+00> : vector<8x96xf32>
    %15 = tpu.matmul %14, %10, %cst_15 {dimension_numbers = #tpu.dot_dimension_numbers<[1], [0], [0], [1], [0, 0, 1, 1], [], []>} : vector<8x32xf32>, vector<32x96xf32>, vector<8x96xf32> -> vector<8x96xf32>
    %16 = arith.addf %15, %13 : vector<8x96xf32>
    %17 = arith.index_cast %c0_i32 : i32 to index
    %c0_16 = arith.constant 0 : index
    %c0_17 = arith.constant 0 : index
    %18 = vector.load %arg11[%17, %c0_16, %c0_17] : memref<8x8x96xf32, #tpu.memory_space<vmem>>, vector<1x8x96xf32>
    %19 = vector.shape_cast %18 : vector<1x8x96xf32> to vector<8x96xf32>
    %20 = vector.extract_strided_slice %19 {offsets = [0, 0], sizes = [8, 32], strides = [1, 1]} : vector<8x96xf32> to vector<8x32xf32>
    %21 = vector.extract_strided_slice %16 {offsets = [0, 0], sizes = [8, 32], strides = [1, 1]} : vector<8x96xf32> to vector<8x32xf32>
    %22 = arith.addf %20, %21 : vector<8x32xf32>
    %23 = arith.negf %22 : vector<8x32xf32>
    %24 = math.exp %23 : vector<8x32xf32>
    %cst_18 = arith.constant 1.000000e+00 : f32
    %25 = vector.broadcast %cst_18 : f32 to vector<8x32xf32>
    %26 = arith.addf %25, %24 : vector<8x32xf32>
    %27 = arith.divf %25, %26 : vector<8x32xf32>
    %28 = vector.extract_strided_slice %19 {offsets = [0, 32], sizes = [8, 32], strides = [1, 1]} : vector<8x96xf32> to vector<8x32xf32>
    %29 = vector.extract_strided_slice %16 {offsets = [0, 32], sizes = [8, 32], strides = [1, 1]} : vector<8x96xf32> to vector<8x32xf32>
    %30 = arith.addf %28, %29 : vector<8x32xf32>
    %31 = arith.negf %30 : vector<8x32xf32>
    %32 = math.exp %31 : vector<8x32xf32>
    %cst_19 = arith.constant 1.000000e+00 : f32
    %33 = vector.broadcast %cst_19 : f32 to vector<8x32xf32>
    %34 = arith.addf %33, %32 : vector<8x32xf32>
    %35 = arith.divf %33, %34 : vector<8x32xf32>
    %36 = vector.extract_strided_slice %19 {offsets = [0, 64], sizes = [8, 32], strides = [1, 1]} : vector<8x96xf32> to vector<8x32xf32>
    %37 = vector.extract_strided_slice %16 {offsets = [0, 64], sizes = [8, 32], strides = [1, 1]} : vector<8x96xf32> to vector<8x32xf32>
    %38 = arith.mulf %27, %37 : vector<8x32xf32>
    %39 = arith.addf %36, %38 : vector<8x32xf32>
    %40 = math.tanh %39 : vector<8x32xf32>
    %cst_20 = arith.constant 1.000000e+00 : f32
    %41 = vector.broadcast %cst_20 : f32 to vector<8x32xf32>
    %42 = arith.subf %41, %35 : vector<8x32xf32>
    %43 = arith.mulf %42, %40 : vector<8x32xf32>
    %44 = arith.mulf %35, %14 : vector<8x32xf32>
    %45 = arith.addf %43, %44 : vector<8x32xf32>
    %46 = arith.index_cast %c0_i32 : i32 to index
    %c0_21 = arith.constant 0 : index
    %c0_22 = arith.constant 0 : index
    %47 = vector.load %arg12[%46, %c0_21, %c0_22] : memref<8x8x32xf32, #tpu.memory_space<vmem>>, vector<1x8x32xf32>
    %48 = vector.shape_cast %47 : vector<1x8x32xf32> to vector<8x32xf32>
    %49 = vector.shape_cast %45 : vector<8x32xf32> to vector<1x8x32xf32>
    tpu.vector_store %arg12[%46, %c0_21, %c0_22], %49 {strides = array<i32>} : memref<8x8x32xf32, #tpu.memory_space<vmem>>, vector<1x8x32xf32>,
    %c1_i32 = arith.constant 1 : i32
    %cst_23 = arith.constant dense<0.000000e+00> : vector<8x96xf32>
    %50 = tpu.matmul %45, %10, %cst_23 {dimension_numbers = #tpu.dot_dimension_numbers<[1], [0], [0], [1], [0, 0, 1, 1], [], []>} : vector<8x32xf32>, vector<32x96xf32>, vector<8x96xf32> -> vector<8x96xf32>
    %51 = arith.addf %50, %13 : vector<8x96xf32>
    %52 = arith.index_cast %c1_i32 : i32 to index
    %c0_24 = arith.constant 0 : index
    %c0_25 = arith.constant 0 : index
    %53 = vector.load %arg11[%52, %c0_24, %c0_25] : memref<8x8x96xf32, #tpu.memory_space<vmem>>, vector<1x8x96xf32>
    %54 = vector.shape_cast %53 : vector<1x8x96xf32> to vector<8x96xf32>
    %55 = vector.extract_strided_slice %54 {offsets = [0, 0], sizes = [8, 32], strides = [1, 1]} : vector<8x96xf32> to vector<8x32xf32>
    %56 = vector.extract_strided_slice %51 {offsets = [0, 0], sizes = [8, 32], strides = [1, 1]} : vector<8x96xf32> to vector<8x32xf32>
    %57 = arith.addf %55, %56 : vector<8x32xf32>
    %58 = arith.negf %57 : vector<8x32xf32>
    %59 = math.exp %58 : vector<8x32xf32>
    %cst_26 = arith.constant 1.000000e+00 : f32
    %60 = vector.broadcast %cst_26 : f32 to vector<8x32xf32>
    %61 = arith.addf %60, %59 : vector<8x32xf32>
    %62 = arith.divf %60, %61 : vector<8x32xf32>
    %63 = vector.extract_strided_slice %54 {offsets = [0, 32], sizes = [8, 32], strides = [1, 1]} : vector<8x96xf32> to vector<8x32xf32>
    %64 = vector.extract_strided_slice %51 {offsets = [0, 32], sizes = [8, 32], strides = [1, 1]} : vector<8x96xf32> to vector<8x32xf32>
    %65 = arith.addf %63, %64 : vector<8x32xf32>
    %66 = arith.negf %65 : vector<8x32xf32>
    %67 = math.exp %66 : vector<8x32xf32>
    %cst_27 = arith.constant 1.000000e+00 : f32
    %68 = vector.broadcast %cst_27 : f32 to vector<8x32xf32>
    %69 = arith.addf %68, %67 : vector<8x32xf32>
    %70 = arith.divf %68, %69 : vector<8x32xf32>
    %71 = vector.extract_strided_slice %54 {offsets = [0, 64], sizes = [8, 32], strides = [1, 1]} : vector<8x96xf32> to vector<8x32xf32>
    %72 = vector.extract_strided_slice %51 {offsets = [0, 64], sizes = [8, 32], strides = [1, 1]} : vector<8x96xf32> to vector<8x32xf32>
    %73 = arith.mulf %62, %72 : vector<8x32xf32>
    %74 = arith.addf %71, %73 : vector<8x32xf32>
    %75 = math.tanh %74 : vector<8x32xf32>
    %cst_28 = arith.constant 1.000000e+00 : f32
    %76 = vector.broadcast %cst_28 : f32 to vector<8x32xf32>
    %77 = arith.subf %76, %70 : vector<8x32xf32>
    %78 = arith.mulf %77, %75 : vector<8x32xf32>
    %79 = arith.mulf %70, %45 : vector<8x32xf32>
    %80 = arith.addf %78, %79 : vector<8x32xf32>
    %81 = arith.index_cast %c1_i32 : i32 to index
    %c0_29 = arith.constant 0 : index
    %c0_30 = arith.constant 0 : index
    %82 = vector.load %arg12[%81, %c0_29, %c0_30] : memref<8x8x32xf32, #tpu.memory_space<vmem>>, vector<1x8x32xf32>
    %83 = vector.shape_cast %82 : vector<1x8x32xf32> to vector<8x32xf32>
    %84 = vector.shape_cast %80 : vector<8x32xf32> to vector<1x8x32xf32>
    tpu.vector_store %arg12[%81, %c0_29, %c0_30], %84 {strides = array<i32>} : memref<8x8x32xf32, #tpu.memory_space<vmem>>, vector<1x8x32xf32>,
    %c2_i32 = arith.constant 2 : i32
    %cst_31 = arith.constant dense<0.000000e+00> : vector<8x96xf32>
    %85 = tpu.matmul %80, %10, %cst_31 {dimension_numbers = #tpu.dot_dimension_numbers<[1], [0], [0], [1], [0, 0, 1, 1], [], []>} : vector<8x32xf32>, vector<32x96xf32>, vector<8x96xf32> -> vector<8x96xf32>
    %86 = arith.addf %85, %13 : vector<8x96xf32>
    %87 = arith.index_cast %c2_i32 : i32 to index
    %c0_32 = arith.constant 0 : index
    %c0_33 = arith.constant 0 : index
    %88 = vector.load %arg11[%87, %c0_32, %c0_33] : memref<8x8x96xf32, #tpu.memory_space<vmem>>, vector<1x8x96xf32>
    %89 = vector.shape_cast %88 : vector<1x8x96xf32> to vector<8x96xf32>
    %90 = vector.extract_strided_slice %89 {offsets = [0, 0], sizes = [8, 32], strides = [1, 1]} : vector<8x96xf32> to vector<8x32xf32>
    %91 = vector.extract_strided_slice %86 {offsets = [0, 0], sizes = [8, 32], strides = [1, 1]} : vector<8x96xf32> to vector<8x32xf32>
    %92 = arith.addf %90, %91 : vector<8x32xf32>
    %93 = arith.negf %92 : vector<8x32xf32>
    %94 = math.exp %93 : vector<8x32xf32>
    %cst_34 = arith.constant 1.000000e+00 : f32
    %95 = vector.broadcast %cst_34 : f32 to vector<8x32xf32>
    %96 = arith.addf %95, %94 : vector<8x32xf32>
    %97 = arith.divf %95, %96 : vector<8x32xf32>
    %98 = vector.extract_strided_slice %89 {offsets = [0, 32], sizes = [8, 32], strides = [1, 1]} : vector<8x96xf32> to vector<8x32xf32>
    %99 = vector.extract_strided_slice %86 {offsets = [0, 32], sizes = [8, 32], strides = [1, 1]} : vector<8x96xf32> to vector<8x32xf32>
    %100 = arith.addf %98, %99 : vector<8x32xf32>
    %101 = arith.negf %100 : vector<8x32xf32>
    %102 = math.exp %101 : vector<8x32xf32>
    %cst_35 = arith.constant 1.000000e+00 : f32
    %103 = vector.broadcast %cst_35 : f32 to vector<8x32xf32>
    %104 = arith.addf %103, %102 : vector<8x32xf32>
    %105 = arith.divf %103, %104 : vector<8x32xf32>
    %106 = vector.extract_strided_slice %89 {offsets = [0, 64], sizes = [8, 32], strides = [1, 1]} : vector<8x96xf32> to vector<8x32xf32>
    %107 = vector.extract_strided_slice %86 {offsets = [0, 64], sizes = [8, 32], strides = [1, 1]} : vector<8x96xf32> to vector<8x32xf32>
    %108 = arith.mulf %97, %107 : vector<8x32xf32>
    %109 = arith.addf %106, %108 : vector<8x32xf32>
    %110 = math.tanh %109 : vector<8x32xf32>
    %cst_36 = arith.constant 1.000000e+00 : f32
    %111 = vector.broadcast %cst_36 : f32 to vector<8x32xf32>
    %112 = arith.subf %111, %105 : vector<8x32xf32>
    %113 = arith.mulf %112, %110 : vector<8x32xf32>
    %114 = arith.mulf %105, %80 : vector<8x32xf32>
    %115 = arith.addf %113, %114 : vector<8x32xf32>
    %116 = arith.index_cast %c2_i32 : i32 to index
    %c0_37 = arith.constant 0 : index
    %c0_38 = arith.constant 0 : index
    %117 = vector.load %arg12[%116, %c0_37, %c0_38] : memref<8x8x32xf32, #tpu.memory_space<vmem>>, vector<1x8x32xf32>
    %118 = vector.shape_cast %117 : vector<1x8x32xf32> to vector<8x32xf32>
    %119 = vector.shape_cast %115 : vector<8x32xf32> to vector<1x8x32xf32>
    tpu.vector_store %arg12[%116, %c0_37, %c0_38], %119 {strides = array<i32>} : memref<8x8x32xf32, #tpu.memory_space<vmem>>, vector<1x8x32xf32>,
    %c3_i32 = arith.constant 3 : i32
    %cst_39 = arith.constant dense<0.000000e+00> : vector<8x96xf32>
    %120 = tpu.matmul %115, %10, %cst_39 {dimension_numbers = #tpu.dot_dimension_numbers<[1], [0], [0], [1], [0, 0, 1, 1], [], []>} : vector<8x32xf32>, vector<32x96xf32>, vector<8x96xf32> -> vector<8x96xf32>
    %121 = arith.addf %120, %13 : vector<8x96xf32>
    %122 = arith.index_cast %c3_i32 : i32 to index
    %c0_40 = arith.constant 0 : index
    %c0_41 = arith.constant 0 : index
    %123 = vector.load %arg11[%122, %c0_40, %c0_41] : memref<8x8x96xf32, #tpu.memory_space<vmem>>, vector<1x8x96xf32>
    %124 = vector.shape_cast %123 : vector<1x8x96xf32> to vector<8x96xf32>
    %125 = vector.extract_strided_slice %124 {offsets = [0, 0], sizes = [8, 32], strides = [1, 1]} : vector<8x96xf32> to vector<8x32xf32>
    %126 = vector.extract_strided_slice %121 {offsets = [0, 0], sizes = [8, 32], strides = [1, 1]} : vector<8x96xf32> to vector<8x32xf32>
    %127 = arith.addf %125, %126 : vector<8x32xf32>
    %128 = arith.negf %127 : vector<8x32xf32>
    %129 = math.exp %128 : vector<8x32xf32>
    %cst_42 = arith.constant 1.000000e+00 : f32
    %130 = vector.broadcast %cst_42 : f32 to vector<8x32xf32>
    %131 = arith.addf %130, %129 : vector<8x32xf32>
    %132 = arith.divf %130, %131 : vector<8x32xf32>
    %133 = vector.extract_strided_slice %124 {offsets = [0, 32], sizes = [8, 32], strides = [1, 1]} : vector<8x96xf32> to vector<8x32xf32>
    %134 = vector.extract_strided_slice %121 {offsets = [0, 32], sizes = [8, 32], strides = [1, 1]} : vector<8x96xf32> to vector<8x32xf32>
    %135 = arith.addf %133, %134 : vector<8x32xf32>
    %136 = arith.negf %135 : vector<8x32xf32>
    %137 = math.exp %136 : vector<8x32xf32>
    %cst_43 = arith.constant 1.000000e+00 : f32
    %138 = vector.broadcast %cst_43 : f32 to vector<8x32xf32>
    %139 = arith.addf %138, %137 : vector<8x32xf32>
    %140 = arith.divf %138, %139 : vector<8x32xf32>
    %141 = vector.extract_strided_slice %124 {offsets = [0, 64], sizes = [8, 32], strides = [1, 1]} : vector<8x96xf32> to vector<8x32xf32>
    %142 = vector.extract_strided_slice %121 {offsets = [0, 64], sizes = [8, 32], strides = [1, 1]} : vector<8x96xf32> to vector<8x32xf32>
    %143 = arith.mulf %132, %142 : vector<8x32xf32>
    %144 = arith.addf %141, %143 : vector<8x32xf32>
    %145 = math.tanh %144 : vector<8x32xf32>
    %cst_44 = arith.constant 1.000000e+00 : f32
    %146 = vector.broadcast %cst_44 : f32 to vector<8x32xf32>
    %147 = arith.subf %146, %140 : vector<8x32xf32>
    %148 = arith.mulf %147, %145 : vector<8x32xf32>
    %149 = arith.mulf %140, %115 : vector<8x32xf32>
    %150 = arith.addf %148, %149 : vector<8x32xf32>
    %151 = arith.index_cast %c3_i32 : i32 to index
    %c0_45 = arith.constant 0 : index
    %c0_46 = arith.constant 0 : index
    %152 = vector.load %arg12[%151, %c0_45, %c0_46] : memref<8x8x32xf32, #tpu.memory_space<vmem>>, vector<1x8x32xf32>
    %153 = vector.shape_cast %152 : vector<1x8x32xf32> to vector<8x32xf32>
    %154 = vector.shape_cast %150 : vector<8x32xf32> to vector<1x8x32xf32>
    tpu.vector_store %arg12[%151, %c0_45, %c0_46], %154 {strides = array<i32>} : memref<8x8x32xf32, #tpu.memory_space<vmem>>, vector<1x8x32xf32>,
    %c4_i32 = arith.constant 4 : i32
    %cst_47 = arith.constant dense<0.000000e+00> : vector<8x96xf32>
    %155 = tpu.matmul %150, %10, %cst_47 {dimension_numbers = #tpu.dot_dimension_numbers<[1], [0], [0], [1], [0, 0, 1, 1], [], []>} : vector<8x32xf32>, vector<32x96xf32>, vector<8x96xf32> -> vector<8x96xf32>
    %156 = arith.addf %155, %13 : vector<8x96xf32>
    %157 = arith.index_cast %c4_i32 : i32 to index
    %c0_48 = arith.constant 0 : index
    %c0_49 = arith.constant 0 : index
    %158 = vector.load %arg11[%157, %c0_48, %c0_49] : memref<8x8x96xf32, #tpu.memory_space<vmem>>, vector<1x8x96xf32>
    %159 = vector.shape_cast %158 : vector<1x8x96xf32> to vector<8x96xf32>
    %160 = vector.extract_strided_slice %159 {offsets = [0, 0], sizes = [8, 32], strides = [1, 1]} : vector<8x96xf32> to vector<8x32xf32>
    %161 = vector.extract_strided_slice %156 {offsets = [0, 0], sizes = [8, 32], strides = [1, 1]} : vector<8x96xf32> to vector<8x32xf32>
    %162 = arith.addf %160, %161 : vector<8x32xf32>
    %163 = arith.negf %162 : vector<8x32xf32>
    %164 = math.exp %163 : vector<8x32xf32>
    %cst_50 = arith.constant 1.000000e+00 : f32
    %165 = vector.broadcast %cst_50 : f32 to vector<8x32xf32>
    %166 = arith.addf %165, %164 : vector<8x32xf32>
    %167 = arith.divf %165, %166 : vector<8x32xf32>
    %168 = vector.extract_strided_slice %159 {offsets = [0, 32], sizes = [8, 32], strides = [1, 1]} : vector<8x96xf32> to vector<8x32xf32>
    %169 = vector.extract_strided_slice %156 {offsets = [0, 32], sizes = [8, 32], strides = [1, 1]} : vector<8x96xf32> to vector<8x32xf32>
    %170 = arith.addf %168, %169 : vector<8x32xf32>
    %171 = arith.negf %170 : vector<8x32xf32>
    %172 = math.exp %171 : vector<8x32xf32>
    %cst_51 = arith.constant 1.000000e+00 : f32
    %173 = vector.broadcast %cst_51 : f32 to vector<8x32xf32>
    %174 = arith.addf %173, %172 : vector<8x32xf32>
    %175 = arith.divf %173, %174 : vector<8x32xf32>
    %176 = vector.extract_strided_slice %159 {offsets = [0, 64], sizes = [8, 32], strides = [1, 1]} : vector<8x96xf32> to vector<8x32xf32>
    %177 = vector.extract_strided_slice %156 {offsets = [0, 64], sizes = [8, 32], strides = [1, 1]} : vector<8x96xf32> to vector<8x32xf32>
    %178 = arith.mulf %167, %177 : vector<8x32xf32>
    %179 = arith.addf %176, %178 : vector<8x32xf32>
    %180 = math.tanh %179 : vector<8x32xf32>
    %cst_52 = arith.constant 1.000000e+00 : f32
    %181 = vector.broadcast %cst_52 : f32 to vector<8x32xf32>
    %182 = arith.subf %181, %175 : vector<8x32xf32>
    %183 = arith.mulf %182, %180 : vector<8x32xf32>
    %184 = arith.mulf %175, %150 : vector<8x32xf32>
    %185 = arith.addf %183, %184 : vector<8x32xf32>
    %186 = arith.index_cast %c4_i32 : i32 to index
    %c0_53 = arith.constant 0 : index
    %c0_54 = arith.constant 0 : index
    %187 = vector.load %arg12[%186, %c0_53, %c0_54] : memref<8x8x32xf32, #tpu.memory_space<vmem>>, vector<1x8x32xf32>
    %188 = vector.shape_cast %187 : vector<1x8x32xf32> to vector<8x32xf32>
    %189 = vector.shape_cast %185 : vector<8x32xf32> to vector<1x8x32xf32>
    tpu.vector_store %arg12[%186, %c0_53, %c0_54], %189 {strides = array<i32>} : memref<8x8x32xf32, #tpu.memory_space<vmem>>, vector<1x8x32xf32>,
    %c5_i32 = arith.constant 5 : i32
    %cst_55 = arith.constant dense<0.000000e+00> : vector<8x96xf32>
    %190 = tpu.matmul %185, %10, %cst_55 {dimension_numbers = #tpu.dot_dimension_numbers<[1], [0], [0], [1], [0, 0, 1, 1], [], []>} : vector<8x32xf32>, vector<32x96xf32>, vector<8x96xf32> -> vector<8x96xf32>
    %191 = arith.addf %190, %13 : vector<8x96xf32>
    %192 = arith.index_cast %c5_i32 : i32 to index
    %c0_56 = arith.constant 0 : index
    %c0_57 = arith.constant 0 : index
    %193 = vector.load %arg11[%192, %c0_56, %c0_57] : memref<8x8x96xf32, #tpu.memory_space<vmem>>, vector<1x8x96xf32>
    %194 = vector.shape_cast %193 : vector<1x8x96xf32> to vector<8x96xf32>
    %195 = vector.extract_strided_slice %194 {offsets = [0, 0], sizes = [8, 32], strides = [1, 1]} : vector<8x96xf32> to vector<8x32xf32>
    %196 = vector.extract_strided_slice %191 {offsets = [0, 0], sizes = [8, 32], strides = [1, 1]} : vector<8x96xf32> to vector<8x32xf32>
    %197 = arith.addf %195, %196 : vector<8x32xf32>
    %198 = arith.negf %197 : vector<8x32xf32>
    %199 = math.exp %198 : vector<8x32xf32>
    %cst_58 = arith.constant 1.000000e+00 : f32
    %200 = vector.broadcast %cst_58 : f32 to vector<8x32xf32>
    %201 = arith.addf %200, %199 : vector<8x32xf32>
    %202 = arith.divf %200, %201 : vector<8x32xf32>
    %203 = vector.extract_strided_slice %194 {offsets = [0, 32], sizes = [8, 32], strides = [1, 1]} : vector<8x96xf32> to vector<8x32xf32>
    %204 = vector.extract_strided_slice %191 {offsets = [0, 32], sizes = [8, 32], strides = [1, 1]} : vector<8x96xf32> to vector<8x32xf32>
    %205 = arith.addf %203, %204 : vector<8x32xf32>
    %206 = arith.negf %205 : vector<8x32xf32>
    %207 = math.exp %206 : vector<8x32xf32>
    %cst_59 = arith.constant 1.000000e+00 : f32
    %208 = vector.broadcast %cst_59 : f32 to vector<8x32xf32>
    %209 = arith.addf %208, %207 : vector<8x32xf32>
    %210 = arith.divf %208, %209 : vector<8x32xf32>
    %211 = vector.extract_strided_slice %194 {offsets = [0, 64], sizes = [8, 32], strides = [1, 1]} : vector<8x96xf32> to vector<8x32xf32>
    %212 = vector.extract_strided_slice %191 {offsets = [0, 64], sizes = [8, 32], strides = [1, 1]} : vector<8x96xf32> to vector<8x32xf32>
    %213 = arith.mulf %202, %212 : vector<8x32xf32>
    %214 = arith.addf %211, %213 : vector<8x32xf32>
    %215 = math.tanh %214 : vector<8x32xf32>
    %cst_60 = arith.constant 1.000000e+00 : f32
    %216 = vector.broadcast %cst_60 : f32 to vector<8x32xf32>
    %217 = arith.subf %216, %210 : vector<8x32xf32>
    %218 = arith.mulf %217, %215 : vector<8x32xf32>
    %219 = arith.mulf %210, %185 : vector<8x32xf32>
    %220 = arith.addf %218, %219 : vector<8x32xf32>
    %221 = arith.index_cast %c5_i32 : i32 to index
    %c0_61 = arith.constant 0 : index
    %c0_62 = arith.constant 0 : index
    %222 = vector.load %arg12[%221, %c0_61, %c0_62] : memref<8x8x32xf32, #tpu.memory_space<vmem>>, vector<1x8x32xf32>
    %223 = vector.shape_cast %222 : vector<1x8x32xf32> to vector<8x32xf32>
    %224 = vector.shape_cast %220 : vector<8x32xf32> to vector<1x8x32xf32>
    tpu.vector_store %arg12[%221, %c0_61, %c0_62], %224 {strides = array<i32>} : memref<8x8x32xf32, #tpu.memory_space<vmem>>, vector<1x8x32xf32>,
    %c6_i32 = arith.constant 6 : i32
    %cst_63 = arith.constant dense<0.000000e+00> : vector<8x96xf32>
    %225 = tpu.matmul %220, %10, %cst_63 {dimension_numbers = #tpu.dot_dimension_numbers<[1], [0], [0], [1], [0, 0, 1, 1], [], []>} : vector<8x32xf32>, vector<32x96xf32>, vector<8x96xf32> -> vector<8x96xf32>
    %226 = arith.addf %225, %13 : vector<8x96xf32>
    %227 = arith.index_cast %c6_i32 : i32 to index
    %c0_64 = arith.constant 0 : index
    %c0_65 = arith.constant 0 : index
    %228 = vector.load %arg11[%227, %c0_64, %c0_65] : memref<8x8x96xf32, #tpu.memory_space<vmem>>, vector<1x8x96xf32>
    %229 = vector.shape_cast %228 : vector<1x8x96xf32> to vector<8x96xf32>
    %230 = vector.extract_strided_slice %229 {offsets = [0, 0], sizes = [8, 32], strides = [1, 1]} : vector<8x96xf32> to vector<8x32xf32>
    %231 = vector.extract_strided_slice %226 {offsets = [0, 0], sizes = [8, 32], strides = [1, 1]} : vector<8x96xf32> to vector<8x32xf32>
    %232 = arith.addf %230, %231 : vector<8x32xf32>
    %233 = arith.negf %232 : vector<8x32xf32>
    %234 = math.exp %233 : vector<8x32xf32>
    %cst_66 = arith.constant 1.000000e+00 : f32
    %235 = vector.broadcast %cst_66 : f32 to vector<8x32xf32>
    %236 = arith.addf %235, %234 : vector<8x32xf32>
    %237 = arith.divf %235, %236 : vector<8x32xf32>
    %238 = vector.extract_strided_slice %229 {offsets = [0, 32], sizes = [8, 32], strides = [1, 1]} : vector<8x96xf32> to vector<8x32xf32>
    %239 = vector.extract_strided_slice %226 {offsets = [0, 32], sizes = [8, 32], strides = [1, 1]} : vector<8x96xf32> to vector<8x32xf32>
    %240 = arith.addf %238, %239 : vector<8x32xf32>
    %241 = arith.negf %240 : vector<8x32xf32>
    %242 = math.exp %241 : vector<8x32xf32>
    %cst_67 = arith.constant 1.000000e+00 : f32
    %243 = vector.broadcast %cst_67 : f32 to vector<8x32xf32>
    %244 = arith.addf %243, %242 : vector<8x32xf32>
    %245 = arith.divf %243, %244 : vector<8x32xf32>
    %246 = vector.extract_strided_slice %229 {offsets = [0, 64], sizes = [8, 32], strides = [1, 1]} : vector<8x96xf32> to vector<8x32xf32>
    %247 = vector.extract_strided_slice %226 {offsets = [0, 64], sizes = [8, 32], strides = [1, 1]} : vector<8x96xf32> to vector<8x32xf32>
    %248 = arith.mulf %237, %247 : vector<8x32xf32>
    %249 = arith.addf %246, %248 : vector<8x32xf32>
    %250 = math.tanh %249 : vector<8x32xf32>
    %cst_68 = arith.constant 1.000000e+00 : f32
    %251 = vector.broadcast %cst_68 : f32 to vector<8x32xf32>
    %252 = arith.subf %251, %245 : vector<8x32xf32>
    %253 = arith.mulf %252, %250 : vector<8x32xf32>
    %254 = arith.mulf %245, %220 : vector<8x32xf32>
    %255 = arith.addf %253, %254 : vector<8x32xf32>
    %256 = arith.index_cast %c6_i32 : i32 to index
    %c0_69 = arith.constant 0 : index
    %c0_70 = arith.constant 0 : index
    %257 = vector.load %arg12[%256, %c0_69, %c0_70] : memref<8x8x32xf32, #tpu.memory_space<vmem>>, vector<1x8x32xf32>
    %258 = vector.shape_cast %257 : vector<1x8x32xf32> to vector<8x32xf32>
    %259 = vector.shape_cast %255 : vector<8x32xf32> to vector<1x8x32xf32>
    tpu.vector_store %arg12[%256, %c0_69, %c0_70], %259 {strides = array<i32>} : memref<8x8x32xf32, #tpu.memory_space<vmem>>, vector<1x8x32xf32>,
    %c7_i32 = arith.constant 7 : i32
    %cst_71 = arith.constant dense<0.000000e+00> : vector<8x96xf32>
    %260 = tpu.matmul %255, %10, %cst_71 {dimension_numbers = #tpu.dot_dimension_numbers<[1], [0], [0], [1], [0, 0, 1, 1], [], []>} : vector<8x32xf32>, vector<32x96xf32>, vector<8x96xf32> -> vector<8x96xf32>
    %261 = arith.addf %260, %13 : vector<8x96xf32>
    %262 = arith.index_cast %c7_i32 : i32 to index
    %c0_72 = arith.constant 0 : index
    %c0_73 = arith.constant 0 : index
    %263 = vector.load %arg11[%262, %c0_72, %c0_73] : memref<8x8x96xf32, #tpu.memory_space<vmem>>, vector<1x8x96xf32>
    %264 = vector.shape_cast %263 : vector<1x8x96xf32> to vector<8x96xf32>
    %265 = vector.extract_strided_slice %264 {offsets = [0, 0], sizes = [8, 32], strides = [1, 1]} : vector<8x96xf32> to vector<8x32xf32>
    %266 = vector.extract_strided_slice %261 {offsets = [0, 0], sizes = [8, 32], strides = [1, 1]} : vector<8x96xf32> to vector<8x32xf32>
    %267 = arith.addf %265, %266 : vector<8x32xf32>
    %268 = arith.negf %267 : vector<8x32xf32>
    %269 = math.exp %268 : vector<8x32xf32>
    %cst_74 = arith.constant 1.000000e+00 : f32
    %270 = vector.broadcast %cst_74 : f32 to vector<8x32xf32>
    %271 = arith.addf %270, %269 : vector<8x32xf32>
    %272 = arith.divf %270, %271 : vector<8x32xf32>
    %273 = vector.extract_strided_slice %264 {offsets = [0, 32], sizes = [8, 32], strides = [1, 1]} : vector<8x96xf32> to vector<8x32xf32>
    %274 = vector.extract_strided_slice %261 {offsets = [0, 32], sizes = [8, 32], strides = [1, 1]} : vector<8x96xf32> to vector<8x32xf32>
    %275 = arith.addf %273, %274 : vector<8x32xf32>
    %276 = arith.negf %275 : vector<8x32xf32>
    %277 = math.exp %276 : vector<8x32xf32>
    %cst_75 = arith.constant 1.000000e+00 : f32
    %278 = vector.broadcast %cst_75 : f32 to vector<8x32xf32>
    %279 = arith.addf %278, %277 : vector<8x32xf32>
    %280 = arith.divf %278, %279 : vector<8x32xf32>
    %281 = vector.extract_strided_slice %264 {offsets = [0, 64], sizes = [8, 32], strides = [1, 1]} : vector<8x96xf32> to vector<8x32xf32>
    %282 = vector.extract_strided_slice %261 {offsets = [0, 64], sizes = [8, 32], strides = [1, 1]} : vector<8x96xf32> to vector<8x32xf32>
    %283 = arith.mulf %272, %282 : vector<8x32xf32>
    %284 = arith.addf %281, %283 : vector<8x32xf32>
    %285 = math.tanh %284 : vector<8x32xf32>
    %cst_76 = arith.constant 1.000000e+00 : f32
    %286 = vector.broadcast %cst_76 : f32 to vector<8x32xf32>
    %287 = arith.subf %286, %280 : vector<8x32xf32>
    %288 = arith.mulf %287, %285 : vector<8x32xf32>
    %289 = arith.mulf %280, %255 : vector<8x32xf32>
    %290 = arith.addf %288, %289 : vector<8x32xf32>
    %291 = arith.index_cast %c7_i32 : i32 to index
    %c0_77 = arith.constant 0 : index
    %c0_78 = arith.constant 0 : index
    %292 = vector.load %arg12[%291, %c0_77, %c0_78] : memref<8x8x32xf32, #tpu.memory_space<vmem>>, vector<1x8x32xf32>
    %293 = vector.shape_cast %292 : vector<1x8x32xf32> to vector<8x32xf32>
    %294 = vector.shape_cast %290 : vector<8x32xf32> to vector<1x8x32xf32>
    tpu.vector_store %arg12[%291, %c0_77, %c0_78], %294 {strides = array<i32>} : memref<8x8x32xf32, #tpu.memory_space<vmem>>, vector<1x8x32xf32>,
    %c8_i32 = arith.constant 8 : i32
    %c0_79 = arith.constant 0 : index
    %c0_80 = arith.constant 0 : index
    %c0_81 = arith.constant 0 : index
    %295 = vector.load %arg12[%c0_79, %c0_80, %c0_81] : memref<8x8x32xf32, #tpu.memory_space<vmem>>, vector<8x8x32xf32>
    %296 = vector.shape_cast %295 : vector<8x8x32xf32> to vector<64x32xf32>
    %c0_82 = arith.constant 0 : index
    %c0_83 = arith.constant 0 : index
    %297 = vector.load %arg6[%c0_82, %c0_83] : memref<32x64xf32, #tpu.memory_space<vmem>>, vector<32x64xf32>
    %cst_84 = arith.constant dense<0.000000e+00> : vector<64x64xf32>
    %298 = tpu.matmul %296, %297, %cst_84 {dimension_numbers = #tpu.dot_dimension_numbers<[1], [0], [0], [1], [0, 0, 1, 1], [], []>} : vector<64x32xf32>, vector<32x64xf32>, vector<64x64xf32> -> vector<64x64xf32>
    %c0_85 = arith.constant 0 : index
    %c0_86 = arith.constant 0 : index
    %299 = vector.load %arg7[%c0_85, %c0_86] : memref<1x64xf32, #tpu.memory_space<vmem>>, vector<1x64xf32>
    %300 = vector.broadcast %299 : vector<1x64xf32> to vector<64x64xf32>
    %301 = arith.addf %298, %300 : vector<64x64xf32>
    %302 = math.tanh %301 : vector<64x64xf32>
    %c0_87 = arith.constant 0 : index
    %c0_88 = arith.constant 0 : index
    %303 = vector.load %arg8[%c0_87, %c0_88] : memref<1x64xf32, #tpu.memory_space<vmem>>, vector<1x64xf32>
    %304 = vector.broadcast %303 : vector<1x64xf32> to vector<64x64xf32>
    %305 = arith.mulf %302, %304 : vector<64x64xf32>
    %cst_89 = arith.constant dense<0.000000e+00> : vector<64xf32>
    %306 = vector.multi_reduction <add>, %305, %cst_89 [1] : vector<64x64xf32> to vector<64xf32>
    %307 = vector.shape_cast %306 : vector<64xf32> to vector<64x1xf32>
    %c0_90 = arith.constant 0 : index
    %c0_91 = arith.constant 0 : index
    %308 = vector.load %arg9[%c0_90, %c0_91] : memref<1x1xf32, #tpu.memory_space<vmem>>, vector<1x1xf32>
    %309 = vector.broadcast %308 : vector<1x1xf32> to vector<64x1xf32>
    %310 = arith.addf %307, %309 : vector<64x1xf32>
    %311 = vector.shape_cast %310 : vector<64x1xf32> to vector<8x8x1xf32>
    %cst_92 = arith.constant dense<0xFF800000> : vector<8x1xf32>
    %312 = vector.multi_reduction <maximumf>, %311, %cst_92 [0] : vector<8x8x1xf32> to vector<8x1xf32>
    %313 = vector.shape_cast %312 : vector<8x1xf32> to vector<1x8x1xf32>
    %314 = vector.broadcast %313 : vector<1x8x1xf32> to vector<8x8x1xf32>
    %315 = arith.subf %311, %314 : vector<8x8x1xf32>
    %316 = math.exp %315 : vector<8x8x1xf32>
    %cst_93 = arith.constant dense<0.000000e+00> : vector<8x1xf32>
    %317 = vector.multi_reduction <add>, %316, %cst_93 [0] : vector<8x8x1xf32> to vector<8x1xf32>
    %318 = vector.shape_cast %317 : vector<8x1xf32> to vector<1x8x1xf32>
    %319 = vector.broadcast %318 : vector<1x8x1xf32> to vector<8x8x1xf32>
    %320 = arith.divf %316, %319 : vector<8x8x1xf32>
    %321 = vector.broadcast %320 : vector<8x8x1xf32> to vector<8x8x32xf32>
    %322 = arith.mulf %321, %295 : vector<8x8x32xf32>
    %cst_94 = arith.constant dense<0.000000e+00> : vector<8x32xf32>
    %323 = vector.multi_reduction <add>, %322, %cst_94 [0] : vector<8x8x32xf32> to vector<8x32xf32>
    %324 = arith.mulf %323, %323 : vector<8x32xf32>
    %cst_95 = arith.constant dense<0.000000e+00> : vector<8xf32>
    %325 = vector.multi_reduction <add>, %324, %cst_95 [1] : vector<8x32xf32> to vector<8xf32>
    %326 = vector.shape_cast %325 : vector<8xf32> to vector<8x1xf32>
    %cst_96 = arith.constant 1.000000e-24 : f32
    %327 = vector.broadcast %cst_96 : f32 to vector<8x1xf32>
    %328 = arith.maximumf %326, %327 : vector<8x1xf32>
    %329 = math.rsqrt %328 : vector<8x1xf32>
    %330 = vector.broadcast %329 : vector<8x1xf32> to vector<8x32xf32>
    %331 = arith.mulf %323, %330 : vector<8x32xf32>
    %c0_97 = arith.constant 0 : index
    %c0_98 = arith.constant 0 : index
    %332 = vector.load %arg10[%c0_97, %c0_98] : memref<8x32xf32, #tpu.memory_space<vmem>>, vector<8x32xf32>
    tpu.vector_store %arg10[%c0_97, %c0_98], %331 {strides = array<i32>} : memref<8x32xf32, #tpu.memory_space<vmem>>, vector<8x32xf32>,
    return
  }
  func.func @transform_0(%arg0: i32) -> (i32, i32, i32, i32) {
    %c0_i32 = arith.constant 0 : i32
    %c0_i32_0 = arith.constant 0 : i32
    %c0_i32_1 = arith.constant 0 : i32
    %c0_i32_2 = arith.constant 0 : i32
    return %arg0, %c0_i32, %c0_i32_0, %c0_i32_1 : i32, i32, i32, i32
  }
  func.func @transform_1(%arg0: i32) -> (i32, i32) {
    %c0_i32 = arith.constant 0 : i32
    %c0_i32_0 = arith.constant 0 : i32
    %c0_i32_1 = arith.constant 0 : i32
    return %c0_i32, %c0_i32_0 : i32, i32
  }
  func.func @transform_2(%arg0: i32) -> (i32, i32) {
    %c0_i32 = arith.constant 0 : i32
    %c0_i32_0 = arith.constant 0 : i32
    %c0_i32_1 = arith.constant 0 : i32
    return %c0_i32, %c0_i32_0 : i32, i32
  }
  func.func @transform_3(%arg0: i32) -> (i32, i32) {
    %c0_i32 = arith.constant 0 : i32
    %c0_i32_0 = arith.constant 0 : i32
    %c0_i32_1 = arith.constant 0 : i32
    return %c0_i32, %c0_i32_0 : i32, i32
  }
  func.func @transform_4(%arg0: i32) -> (i32, i32) {
    %c0_i32 = arith.constant 0 : i32
    %c0_i32_0 = arith.constant 0 : i32
    %c0_i32_1 = arith.constant 0 : i32
    return %c0_i32, %c0_i32_0 : i32, i32
  }
  func.func @transform_5(%arg0: i32) -> (i32, i32) {
    %c0_i32 = arith.constant 0 : i32
    %c0_i32_0 = arith.constant 0 : i32
    %c0_i32_1 = arith.constant 0 : i32
    return %c0_i32, %c0_i32_0 : i32, i32
  }
  func.func @transform_6(%arg0: i32) -> (i32, i32) {
    %c0_i32 = arith.constant 0 : i32
    %c0_i32_0 = arith.constant 0 : i32
    %c0_i32_1 = arith.constant 0 : i32
    return %c0_i32, %c0_i32_0 : i32, i32
  }
  func.func @transform_7(%arg0: i32) -> (i32, i32) {
    %c0_i32 = arith.constant 0 : i32
    %c0_i32_0 = arith.constant 0 : i32
    %c0_i32_1 = arith.constant 0 : i32
    return %c0_i32, %c0_i32_0 : i32, i32
  }
  func.func @transform_8(%arg0: i32) -> (i32, i32) {
    %c0_i32 = arith.constant 0 : i32
    %c0_i32_0 = arith.constant 0 : i32
    %c0_i32_1 = arith.constant 0 : i32
    return %c0_i32, %c0_i32_0 : i32, i32
  }
  func.func @transform_9(%arg0: i32) -> (i32, i32) {
    %c0_i32 = arith.constant 0 : i32
    %c0_i32_0 = arith.constant 0 : i32
    return %arg0, %c0_i32 : i32, i32
  }
}

</mosaic_0001>

<bundles_post_ra>
// kernel: tpu_custom_call.1
= control target key start
LH: loop header
LB: loop body
LE: loop exit
PB: predicated region body
PF: predicated region fallthrough
CT: control target
= control target key end

     0   :  { %s2261_s0 = inlined_call_operand.hbm [shape: f32[1,8,8,32], index: 0, kind: input, shape index: {}]   ;;  %s2262_s1 = inlined_call_operand.hbm [shape: f32[32,96], index: 1, kind: input, shape index: {}]   ;;  %s2263_s2 = inlined_call_operand.vmem [shape: f32[1,96], index: 2, kind: input, shape index: {}]   ;;  %s2264_s3 = inlined_call_operand.hbm [shape: f32[32,96], index: 3, kind: input, shape index: {}]   ;;  %s2265_s4 = inlined_call_operand.vmem [shape: f32[1,96], index: 4, kind: input, shape index: {}]   ;;  %s2266_s5 = inlined_call_operand.hbm [shape: f32[32,64], index: 5, kind: input, shape index: {}]   ;;  %s2267_s6 = inlined_call_operand.vmem [shape: f32[1,64], index: 6, kind: input, shape index: {}]   ;;  %s2268_s7 = inlined_call_operand.vmem [shape: f32[1,64], index: 7, kind: input, shape index: {}]   ;;  %s2269_s8 = inlined_call_operand.<no memory space> [shape: f32[1,1], index: 8, kind: input, shape index: {}]   ;;  %s2270_s9 = inlined_call_operand.hbm [shape: f32[8,32], index: 9, kind: output, shape index: {}]  }
   0x1   :  { %v14_v0 = vstv %s2269_s8 }
   0x2   :  { %15 = vst [vmem:[#allocation4] sm:$0x1] %v14_v0 }
   0x3   :  { %16 = vsyncpa [#allocation6], 0 }
   0x4   :  { %17 = vsyncpa [#allocation9], 0 }
   0x5   :  { %18 = vsyncpa [#allocation12], 0 }
   0x6   :  { %19 = vsyncpa [#allocation7], 0  ;;  %s1911_s11 = smov [#allocation8]   ;;  %s1912_s13 = smov [#allocation5]  }
   0x7   :  { %s37_s12 = sshll.u32 %s1911_s11, 4  ;;  %s25_s14 = sshll.u32 %s1912_s13, 4  ;;  %s38_s12 = int_to_ptr.vmem [resolvable:$true] %s37_s12  ;;  %s26_s14 = int_to_ptr.vmem [resolvable:$true] %s25_s14 }
   0x8   :  { %s1811_s15 = scalar_lea.vmem %s38_s12, 512  ;;  %p1816_p1 = scmp.lt.s32.totalorder %s38_s12, %s38_s12 }
   0x9   :  { %p1812_p0 = scmp.ne.s32.totalorder %s38_s12, %s1811_s15  ;;  %p1817_p2 = scmp.lt.s32.totalorder %s1811_s15, %s1811_s15 }
   0xb   :  { %p1818_p3 = por %p1817_p2, %p1816_p1 }
   0xd   :  { %p1819_p4 = pnand %p1818_p3, %p1812_p0 }
   0xf   :  { %1822 = shalt.err (!%p1819_p4)
}
  0x10   :  { %s1913_s16 = smov 128   ;;  %s1914_s8 = smov 8  }
  0x11   :  { %43 = dma.hbm_to_vmem [thread:$0]  %s2262_s1, 512, %s38_s12, [#allocation9], %s1913_s16, %s1913_s16, %s1914_s8  }
  0x12   :  { %s1831_s19 = scalar_lea.vmem %s26_s14, 1024  ;;  %p1836_p6 = scmp.lt.s32.totalorder %s26_s14, %s26_s14 }
  0x13   :  { %p1832_p5 = scmp.ne.s32.totalorder %s26_s14, %s1831_s19  ;;  %p1837_p7 = scmp.lt.s32.totalorder %s1831_s19, %s1831_s19 }
  0x15   :  { %p1838_p8 = por %p1837_p7, %p1836_p6 }
  0x17   :  { %p1839_p9 = pnand %p1838_p8, %p1832_p5 }
  0x19   :  { %1842 = shalt.err (!%p1839_p9)
}
  0x1a   :  { %31 = dma.hbm_to_vmem [thread:$0]  %s2261_s0, 1024, %s26_s14, [#allocation6], %s1913_s16, %s1913_s16, %s1914_s8  }
  0x1b   :  { %s1915_s22 = smov [#allocation10]   ;;  %s1916_s24 = smov [#allocation11]  }
  0x1c   :  { %s51_s23 = sshll.u32 %s1915_s22, 4  ;;  %s65_s25 = sshll.u32 %s1916_s24, 4  ;;  %s52_s23 = int_to_ptr.vmem [resolvable:$true] %s51_s23  ;;  %s66_s25 = int_to_ptr.vmem [resolvable:$true] %s65_s25 }
  0x1d   :  { %s1851_s1 = scalar_lea.vmem %s52_s23, 512  ;;  %p1856_p11 = scmp.lt.s32.totalorder %s52_s23, %s52_s23 }
  0x1e   :  { %p1852_p10 = scmp.ne.s32.totalorder %s52_s23, %s1851_s1  ;;  %p1857_p12 = scmp.lt.s32.totalorder %s1851_s1, %s1851_s1 }
  0x20   :  { %p1858_p13 = por %p1857_p12, %p1856_p11 }
  0x22   :  { %p1859_p0 = pnand %p1858_p13, %p1852_p10 }
  0x24   :  { %1862 = shalt.err (!%p1859_p0)
}
  0x25   :  { %57 = dma.hbm_to_vmem [thread:$0]  %s2264_s3, 512, %s52_s23, [#allocation9], %s1913_s16, %s1913_s16, %s1914_s8  }
  0x26   :  { %s1871_s0 = scalar_lea.vmem %s66_s25, 512  ;;  %p1876_p2 = scmp.lt.s32.totalorder %s66_s25, %s66_s25 }
  0x27   :  { %p1872_p1 = scmp.ne.s32.totalorder %s66_s25, %s1871_s0  ;;  %p1877_p3 = scmp.lt.s32.totalorder %s1871_s0, %s1871_s0 }
  0x29   :  { %p1878_p4 = por %p1877_p3, %p1876_p2 }
  0x2b   :  { %p1879_p5 = pnand %p1878_p4, %p1872_p1 }
  0x2d   :  { %1882 = shalt.err (!%p1879_p5)
}
  0x2e   :  { %71 = dma.hbm_to_vmem [thread:$0]  %s2266_s5, 512, %s66_s25, [#allocation12], %s1913_s16, %s1913_s16, %s1914_s8  }
  0x2f   :  { %1903 = dma.done.wait [#allocation6], 1024  }
  0x30   :  { %1904 = vsyncadd [#allocation6], 4294966272 }
  0x31   :  { %1905 = dma.done.wait [#allocation9], 1024  }
  0x32   :  { %1906 = vsyncadd [#allocation9], 4294966272 }
  0x33   :  { %1907 = dma.done.wait [#allocation12], 512  }
  0x34   :  { %1908 = vsyncadd [#allocation12], 4294966784  ;;  %v101_v1 = vld [vmem:[#allocation8 + $0x18] sm:$0xff]  ;;  %v100_v2 = vld [vmem:[#allocation8 + $0x10] sm:$0xff]  ;;  %vm109_vm0 = vcmask 261120   ;;  %v1917_v11 = vmov 0.0  }
  0x35   :  { %1569 = vmatprep.subr.mxu0 %v101_v1  ;;  %1697 = vmatprep.subr.mxu1 %v101_v1  ;;  %v99_v3 = vld [vmem:[#allocation8 + $0x8] sm:$0xff]  ;;  %v98_v4 = vld [vmem:[#allocation8] sm:$0xff]  ;;  %v96_v9 = vld [vmem:[#allocation5 + $0x30] sm:$0xff]  ;;  %vm1918_vm1 = vmmov 0   ;;  %vm239_vm2 = vcmask 785408   ;;  %s1919_s10 = smov 64  }
  0x36   :  { %1570 = vmatpush3.msra.mxu0 %v101_v1  ;;  %1701 = vmatpush3.msra.mxu1 %v101_v1  ;;  %v90_v5 = vld [vmem:[#allocation5] sm:$0xff]  ;;  %v91_v7 = vld [vmem:[#allocation5 + $0x8] sm:$0xff]  ;;  %v2002_v10 = vld [vmem:[#allocation10 + $0x18] sm:$0xff]  ;;  %vm1277_vm3 = vcmask 523264   ;;  %vm1317_vm4 = vcmask 7168  }
  0x37   :  { %1571 = vmatprep.subr.mxu0 %v100_v2  ;;  %1698 = vmatprep.subr.mxu1 %v100_v2  ;;  %v94_v6 = vld [vmem:[#allocation5 + $0x20] sm:$0xff]  ;;  %v95_v8 = vld [vmem:[#allocation5 + $0x28] sm:$0xff]  ;;  %v2008_v12 = vld [vmem:[#allocation10 + $0x10] sm:$0xff] }
  0x38   :  { %1572 = vmatpush3.msra.mxu0 %v100_v2  ;;  %1702 = vmatpush3.msra.mxu1 %v100_v2  ;;  %v97_v13 = vld [vmem:[#allocation5 + $0x38] sm:$0xff]  ;;  %v2013_v14 = vld [vmem:[#allocation10 + $0x8] sm:$0xff]  ;;  %v2020_v15 = vld [vmem:[#allocation10] sm:$0xff] }
  0x39   :  { %1573 = vmatprep.subr.mxu0 %v99_v3  ;;  %1699 = vmatprep.subr.mxu1 %v99_v3  ;;  %v2048_v16 = vld [vmem:[%s2263_s2] ss:$0 sm:$0xff]  ;;  %v92_v63 = vld [vmem:[#allocation5 + $0x10] sm:$0xff] }
  0x3a   :  { %1574 = vmatpush3.msra.mxu0 %v99_v3  ;;  %1703 = vmatpush3.msra.mxu1 %v99_v3  ;;  %v2062_v28 = vld [vmem:[%s2265_s4] ss:$0 sm:$0xff]  ;;  %s1920_s4 = smov 96  }
  0x3b   :  { %1575 = vmatprep.subr.mxu0 %v98_v4  ;;  %1700 = vmatprep.subr.mxu1 %v98_v4  ;;  %v93_v0 = vld [vmem:[#allocation5 + $0x18] sm:$0xff] }
  0x3c   :  { %1576 = vmatpush3.msra.mxu0 %v98_v4  ;;  %1704 = vmatpush3.msra.mxu1 %v98_v4 }
  0x3d   :  { %1577 = vmatprep.mubr.msk.f32.mxu0 %vm109_vm0, %v90_v5  ;;  %1583 = vmatprep.mubr.msk.f32.mxu1 %vm109_vm0, %v94_v6 }
  0x3e   :  { %1578 = vmatmul.mubr.msk.f32.vlgmr.msra.gmra.mxu0 %vm109_vm0, %v91_v7  ;;  %1584 = vmatmul.mubr.msk.f32.vlgmr.msra.gmra.mxu1 %vm109_vm0, %v95_v8 }
  0x3f   :  { %1589 = vmatprep.subr.mxu1 %v1917_v11  ;;  %1586 = vmatprep.mubr.msk.f32.mxu1 %vm109_vm0, %v96_v9 }
  0x40   :  { %1590 = vmatpush3.msra.mxu1 %v2002_v10  ;;  %1611 = vmatprep.subr.mxu0 %v1917_v11 }
  0x41   :  { %1591 = vmatprep.subr.mxu1 %v1917_v11  ;;  %1612 = vmatpush3.msra.mxu0 %v2002_v10 }
  0x42   :  { %1592 = vmatpush3.msra.mxu1 %v2008_v12  ;;  %1613 = vmatprep.subr.mxu0 %v1917_v11 }
  0x43   :  { %1587 = vmatmul.mubr.msk.f32.gmra.mxu1 %vm109_vm0, %v97_v13  ;;  %1593 = vmatprep.subr.mxu1 %v1917_v11 }
  0x44   :  { %1594 = vmatpush3.msra.mxu1 %v2013_v14  ;;  %1597 = vmatprep.mubr.msk.f32.mxu1 %vm1918_vm1, %v1917_v11 }
  0x45   :  { %1595 = vmatprep.subr.mxu1 %v1917_v11  ;;  %1614 = vmatpush3.msra.mxu0 %v2008_v12 }
  0x46   :  { %1596 = vmatpush3.msra.mxu1 %v2020_v15  ;;  %1615 = vmatprep.subr.mxu0 %v1917_v11 }
  0x47   :  { %1598 = vmatmul.mubr.f32.vlgmr.msra.gmra.mxu1 %v1917_v11  ;;  %1600 = vmatprep.subr.mxu1 %v1917_v11 }
  0x48   :  { %1601 = vmatpush3.msra.mxu1 %v2002_v10  ;;  %1608 = vmatprep.mubr.msk.f32.mxu1 %vm1918_vm1, %v1917_v11 }
  0x49   :  { %1602 = vmatprep.subr.mxu1 %v1917_v11  ;;  %1616 = vmatpush3.msra.mxu0 %v2013_v14 }
  0x4a   :  { %1603 = vmatpush3.msra.mxu1 %v2008_v12  ;;  %1617 = vmatprep.subr.mxu0 %v1917_v11 }
  0x4b   :  { %1604 = vmatprep.subr.mxu1 %v1917_v11  ;;  %1618 = vmatpush3.msra.mxu0 %v2020_v15 }
  0x4c   :  { %1605 = vmatpush3.msra.mxu1 %v2013_v14  ;;  %1633 = vmatprep.subr.mxu0 %v1917_v11 }
  0x4d   :  { %1606 = vmatprep.subr.mxu1 %v1917_v11  ;;  %1580 = vmatprep.mubr.msk.f32.mxu0 %vm109_vm0, %v92_v63 }
  0x4e   :  { %1607 = vmatpush3.msra.mxu1 %v2020_v15  ;;  %1581 = vmatmul.mubr.msk.f32.gmra.mxu0 %vm109_vm0, %v93_v0 }
  0x4f   :  { %1622 = vmatprep.subr.mxu1 %v1917_v11  ;;  %1619 = vmatprep.mubr.msk.f32.mxu0 %vm1918_vm1, %v1917_v11 }
  0xfe   :  { %v1579_v17 = vpop.f32.mrf.mxu0  ;;  %v1585_v18 = vpop.f32.mrf.mxu1 }
  0xff   :  { %v206_v19 = vadd.f32 %v1579_v17, %v2048_v16  ;;  %v226_v20 = vadd.f32 %v1585_v18, %v2048_v16 }
 0x100   :  { %v200_v21 = vpop.f32.mrf.mxu0  ;;  %v220_v22 = vpop.f32.mrf.mxu1 }
 0x101   :  { %241 = vst.msk [vmem:[#allocation2 + $0x8] sm:$0xff] %vm239_vm2, %v206_v19  ;;  %245 = vst.msk [vmem:[#allocation2 + $0x28] sm:$0xff] %vm239_vm2, %v226_v20  ;;  %v201_v23 = vadd.f32 %v2048_v16, %v200_v21  ;;  %v221_v24 = vadd.f32 %v2048_v16, %v220_v22 }
 0x103   :  { %240 = vst.msk [vmem:[#allocation2] sm:$0xff] %vm239_vm2, %v201_v23  ;;  %244 = vst.msk [vmem:[#allocation2 + $0x20] sm:$0xff] %vm239_vm2, %v221_v24  ;;  %v1588_v25 = vpop.f32.mrf.mxu1 }
 0x104   :  { %v236_v26 = vadd.f32 %v1588_v25, %v2048_v16 }
 0x105   :  { %v230_v27 = vpop.f32.mrf.mxu1 }
 0x106   :  { %247 = vst.msk [vmem:[#allocation2 + $0x38] sm:$0xff] %vm239_vm2, %v236_v26  ;;  %v231_v29 = vadd.f32 %v2048_v16, %v230_v27 }
 0x107   :  { %v328_v30 = vpop.f32.mrf.mxu1 }
 0x108   :  { %246 = vst.msk [vmem:[#allocation2 + $0x30] sm:$0xff] %vm239_vm2, %v231_v29  ;;  %v329_v31 = vadd.f32 %v2062_v28, %v328_v30  ;;  %v437_v53 = vld [vmem:[#allocation2 + $0x8] sm:$0xff] }
 0x109   :  { %v1599_v32 = vpop.f32.mrf.mxu1 }
 0x10a   :  { %341 = vrot.lane.b32.xlu0 %v329_v31, %s1919_s10  ;;  %v332_v33 = vld [vmem:[#allocation2] sm:$0xff] }
 0x10b   :  { %v333_v34 = vadd.f32 %v332_v33, %v329_v31 }
 0x10d   :  { %v1479_v35 = vmul.f32 -1.442695, %v333_v34 }
 0x10e   :  { %v1582_v7 = vpop.f32.mrf.mxu0 }
 0x10f   :  { %1719 = vpow2.f32 %v1479_v35  ;;  %v216_v8 = vadd.f32 %v1582_v7, %v2048_v16 }
 0x110   :  { %v210_v9 = vpop.f32.mrf.mxu0 }
 0x111   :  { %243 = vst.msk [vmem:[#allocation2 + $0x18] sm:$0xff] %vm239_vm2, %v216_v8  ;;  %v211_v13 = vadd.f32 %v2048_v16, %v210_v9 }
 0x113   :  { %242 = vst.msk [vmem:[#allocation2 + $0x10] sm:$0xff] %vm239_vm2, %v211_v13 }
 0x11a   :  { %v543_v20 = vld [vmem:[#allocation2 + $0x10] sm:$0xff] }
 0x11c   :  { %v1720_v36 = vpop.eup %1719 }
 0x11d   :  { %v337_v37 = vadd.f32 1.0, %v1720_v36 }
 0x11f   :  { %1721 = vrcp.f32 %v337_v37 }
 0x12c   :  { %v1722_v38 = vpop.eup %1721 }
 0x12d   :  { %v351_v44 = vsub.f32 1.0, %v1722_v38  ;;  %v357_v46 = vmul.f32 0.0, %v1722_v38 }
 0x17c   :  { %v342_v39 = vpop.permute.xlu0 %341 }
 0x17d   :  { %v344_v40 = vmul.f32 %v1722_v38, %v342_v39 }
 0x17f   :  { %346 = vrot.lane.b32.xlu0 %v344_v40, %s1919_s10 }
 0x1f1   :  { %v347_v41 = vpop.permute.xlu0 %346 }
 0x1f2   :  { %v349_v42 = vadd.f32 %v347_v41, %v332_v33  ;;  %v649_v41 = vld [vmem:[#allocation2 + $0x18] sm:$0xff] }
 0x1f4   :  { %1723 = vtanh.f32 %v349_v42 }
 0x201   :  { %v1724_v43 = vpop.eup %1723 }
 0x202   :  { %353 = vrot.lane.b32.xlu1 %v1724_v43, %s1920_s4 }
 0x274   :  { %v354_v45 = vpop.permute.xlu1 %353 }
 0x275   :  { %v356_v47 = vmul.f32 %v354_v45, %v351_v44 }
 0x277   :  { %v358_v48 = vadd.f32 %v357_v46, %v356_v47 }
 0x279   :  { %360 = vrot.lane.b32.xlu1 %v358_v48, %s1920_s4 }
 0x2eb   :  { %v361_v49 = vpop.permute.xlu1 %360 }
 0x2ec   :  { %363 = vst.msk [vmem:[#allocation3] sm:$0xff] %vm109_vm0, %v361_v49  ;;  %1609 = vmatmul.mubr.msk.f32.vlgmr.msra.gmra.mxu1 %vm109_vm0, %v361_v49 }
 0x2ed   :  { %1623 = vmatpush3.msra.mxu1 %v2002_v10  ;;  %1630 = vmatprep.mubr.msk.f32.mxu1 %vm1918_vm1, %v1917_v11 }
 0x2ee   :  { %1624 = vmatprep.subr.mxu1 %v1917_v11 }
 0x2ef   :  { %1625 = vmatpush3.msra.mxu1 %v2008_v12 }
 0x2f0   :  { %1626 = vmatprep.subr.mxu1 %v1917_v11 }
 0x2f1   :  { %1627 = vmatpush3.msra.mxu1 %v2013_v14 }
 0x2f2   :  { %1628 = vmatprep.subr.mxu1 %v1917_v11 }
 0x2f3   :  { %1629 = vmatpush3.msra.mxu1 %v2020_v15 }
 0x2f4   :  { %1644 = vmatprep.subr.mxu1 %v1917_v11 }
 0x3ac   :  { %v432_v50 = vpop.f32.mrf.mxu1 }
 0x3ad   :  { %v433_v51 = vadd.f32 %v2062_v28, %v432_v50 }
 0x3ae   :  { %v1610_v52 = vpop.f32.mrf.mxu1 }
 0x3af   :  { %446 = vrot.lane.b32.xlu0 %v433_v51, %s1919_s10  ;;  %v438_v54 = vadd.f32 %v437_v53, %v433_v51 }
 0x3b1   :  { %v1481_v55 = vmul.f32 -1.442695, %v438_v54 }
 0x3b3   :  { %1725 = vpow2.f32 %v1481_v55 }
 0x3c0   :  { %v1726_v56 = vpop.eup %1725 }
 0x3c1   :  { %v442_v57 = vadd.f32 1.0, %v1726_v56 }
 0x3c3   :  { %1727 = vrcp.f32 %v442_v57 }
 0x3d0   :  { %v1728_v58 = vpop.eup %1727 }
 0x3d1   :  { %v456_v2 = vsub.f32 1.0, %v1728_v58  ;;  %v462_v4 = vmul.f32 %v1728_v58, %v358_v48 }
 0x421   :  { %v447_v59 = vpop.permute.xlu0 %446 }
 0x422   :  { %v449_v60 = vmul.f32 %v1728_v58, %v447_v59 }
 0x424   :  { %451 = vrot.lane.b32.xlu1 %v449_v60, %s1919_s10 }
 0x496   :  { %v452_v61 = vpop.permute.xlu1 %451 }
 0x497   :  { %v454_v62 = vadd.f32 %v452_v61, %v437_v53  ;;  %v755_v61 = vld [vmem:[#allocation2 + $0x20] sm:$0xff] }
 0x499   :  { %1729 = vtanh.f32 %v454_v62 }
 0x4a6   :  { %v1730_v1 = vpop.eup %1729 }
 0x4a7   :  { %458 = vrot.lane.b32.xlu0 %v1730_v1, %s1920_s4 }
 0x519   :  { %v459_v3 = vpop.permute.xlu0 %458 }
 0x51a   :  { %v461_v5 = vmul.f32 %v459_v3, %v456_v2 }
 0x51c   :  { %v463_v6 = vadd.f32 %v462_v4, %v461_v5 }
 0x51e   :  { %465 = vrot.lane.b32.xlu1 %v463_v6, %s1920_s4 }
 0x590   :  { %v466_v17 = vpop.permute.xlu1 %465 }
 0x591   :  { %469 = vst.msk [vmem:[#allocation3 + $0x8] sm:$0xff] %vm109_vm0, %v466_v17  ;;  %1620 = vmatmul.mubr.msk.f32.vlgmr.msra.gmra.mxu0 %vm109_vm0, %v466_v17 }
 0x592   :  { %1634 = vmatpush3.msra.mxu0 %v2002_v10  ;;  %1641 = vmatprep.mubr.msk.f32.mxu0 %vm1918_vm1, %v1917_v11 }
 0x593   :  { %1635 = vmatprep.subr.mxu0 %v1917_v11 }
 0x594   :  { %1636 = vmatpush3.msra.mxu0 %v2008_v12 }
 0x595   :  { %1637 = vmatprep.subr.mxu0 %v1917_v11 }
 0x596   :  { %1638 = vmatpush3.msra.mxu0 %v2013_v14 }
 0x597   :  { %1639 = vmatprep.subr.mxu0 %v1917_v11 }
 0x598   :  { %1640 = vmatpush3.msra.mxu0 %v2020_v15 }
 0x599   :  { %1655 = vmatprep.subr.mxu0 %v1917_v11 }
 0x651   :  { %v538_v16 = vpop.f32.mrf.mxu0 }
 0x652   :  { %v539_v18 = vadd.f32 %v2062_v28, %v538_v16 }
 0x653   :  { %v1621_v19 = vpop.f32.mrf.mxu0 }
 0x654   :  { %552 = vrot.lane.b32.xlu0 %v539_v18, %s1919_s10  ;;  %v544_v21 = vadd.f32 %v543_v20, %v539_v18 }
 0x656   :  { %v1483_v22 = vmul.f32 -1.442695, %v544_v21 }
 0x658   :  { %1731 = vpow2.f32 %v1483_v22 }
 0x665   :  { %v1732_v23 = vpop.eup %1731 }
 0x666   :  { %v548_v24 = vadd.f32 1.0, %v1732_v23 }
 0x668   :  { %1733 = vrcp.f32 %v548_v24 }
 0x675   :  { %v1734_v25 = vpop.eup %1733 }
 0x676   :  { %v562_v32 = vsub.f32 1.0, %v1734_v25  ;;  %v568_v34 = vmul.f32 %v1734_v25, %v463_v6 }
 0x6c6   :  { %v553_v26 = vpop.permute.xlu0 %552 }
 0x6c7   :  { %v555_v27 = vmul.f32 %v1734_v25, %v553_v26 }
 0x6c9   :  { %557 = vrot.lane.b32.xlu1 %v555_v27, %s1919_s10  ;;  %v1117_v27 = vld [vmem:[#allocation11 + $0x18] sm:$0xff] }
 0x73b   :  { %v558_v29 = vpop.permute.xlu1 %557 }
 0x73c   :  { %v560_v30 = vadd.f32 %v558_v29, %v543_v20 }
 0x73e   :  { %1735 = vtanh.f32 %v560_v30 }
 0x74b   :  { %v1736_v31 = vpop.eup %1735 }
 0x74c   :  { %564 = vrot.lane.b32.xlu0 %v1736_v31, %s1920_s4 }
 0x7be   :  { %v565_v33 = vpop.permute.xlu0 %564 }
 0x7bf   :  { %v567_v35 = vmul.f32 %v565_v33, %v562_v32 }
 0x7c1   :  { %v569_v36 = vadd.f32 %v568_v34, %v567_v35 }
 0x7c3   :  { %571 = vrot.lane.b32.xlu1 %v569_v36, %s1920_s4 }
 0x835   :  { %v572_v37 = vpop.permute.xlu1 %571 }
 0x836   :  { %575 = vst.msk [vmem:[#allocation3 + $0x10] sm:$0xff] %vm109_vm0, %v572_v37  ;;  %1631 = vmatmul.mubr.msk.f32.vlgmr.msra.gmra.mxu1 %vm109_vm0, %v572_v37  ;;  %v2165_v37 = vld [vmem:[#allocation3] sm:$0xff] }
 0x837   :  { %1645 = vmatpush3.msra.mxu1 %v2002_v10  ;;  %1652 = vmatprep.mubr.msk.f32.mxu1 %vm1918_vm1, %v1917_v11 }
 0x838   :  { %1646 = vmatprep.subr.mxu1 %v1917_v11 }
 0x839   :  { %1647 = vmatpush3.msra.mxu1 %v2008_v12 }
 0x83a   :  { %1648 = vmatprep.subr.mxu1 %v1917_v11 }
 0x83b   :  { %1649 = vmatpush3.msra.mxu1 %v2013_v14 }
 0x83c   :  { %1650 = vmatprep.subr.mxu1 %v1917_v11 }
 0x83d   :  { %1651 = vmatpush3.msra.mxu1 %v2020_v15 }
 0x83e   :  { %1666 = vmatprep.subr.mxu1 %v1917_v11 }
 0x8f6   :  { %v644_v38 = vpop.f32.mrf.mxu1 }
 0x8f7   :  { %v645_v39 = vadd.f32 %v2062_v28, %v644_v38  ;;  %v1115_v38 = vld [vmem:[#allocation11 + $0x8] sm:$0xff] }
 0x8f8   :  { %v1632_v40 = vpop.f32.mrf.mxu1 }
 0x8f9   :  { %658 = vrot.lane.b32.xlu0 %v645_v39, %s1919_s10  ;;  %v650_v42 = vadd.f32 %v649_v41, %v645_v39  ;;  %v1114_v39 = vld [vmem:[#allocation11] sm:$0xff] }
 0x8fa   :  { %v2169_v40 = vld [vmem:[#allocation3 + $0x8] sm:$0xff] }
 0x8fb   :  { %v1485_v43 = vmul.f32 -1.442695, %v650_v42 }
 0x8fd   :  { %1737 = vpow2.f32 %v1485_v43 }
 0x90a   :  { %v1738_v44 = vpop.eup %1737 }
 0x90b   :  { %v654_v45 = vadd.f32 1.0, %v1738_v44 }
 0x90d   :  { %1739 = vrcp.f32 %v654_v45 }
 0x91a   :  { %v1740_v46 = vpop.eup %1739 }
 0x91b   :  { %v668_v52 = vsub.f32 1.0, %v1740_v46  ;;  %v674_v54 = vmul.f32 %v1740_v46, %v569_v36  ;;  %v1116_v36 = vld [vmem:[#allocation11 + $0x10] sm:$0xff] }
 0x96b   :  { %v659_v47 = vpop.permute.xlu0 %658 }
 0x96c   :  { %v661_v48 = vmul.f32 %v1740_v46, %v659_v47 }
 0x96e   :  { %663 = vrot.lane.b32.xlu1 %v661_v48, %s1919_s10  ;;  %v967_v48 = vld [vmem:[#allocation2 + $0x30] sm:$0xff] }
 0x9e0   :  { %v664_v49 = vpop.permute.xlu1 %663 }
 0x9e1   :  { %v666_v50 = vadd.f32 %v664_v49, %v649_v41  ;;  %v2173_v41 = vld [vmem:[#allocation3 + $0x10] sm:$0xff] }
 0x9e3   :  { %1741 = vtanh.f32 %v666_v50 }
 0x9f0   :  { %v1742_v51 = vpop.eup %1741 }
 0x9f1   :  { %670 = vrot.lane.b32.xlu0 %v1742_v51, %s1920_s4 }
 0xa63   :  { %v671_v53 = vpop.permute.xlu0 %670 }
 0xa64   :  { %v673_v55 = vmul.f32 %v671_v53, %v668_v52 }
 0xa66   :  { %v675_v56 = vadd.f32 %v674_v54, %v673_v55 }
 0xa68   :  { %677 = vrot.lane.b32.xlu1 %v675_v56, %s1920_s4 }
 0xada   :  { %v678_v57 = vpop.permute.xlu1 %677 }
 0xadb   :  { %681 = vst.msk [vmem:[#allocation3 + $0x18] sm:$0xff] %vm109_vm0, %v678_v57  ;;  %1642 = vmatmul.mubr.msk.f32.vlgmr.msra.gmra.mxu0 %vm109_vm0, %v678_v57 }
 0xadc   :  { %1656 = vmatpush3.msra.mxu0 %v2002_v10  ;;  %1663 = vmatprep.mubr.msk.f32.mxu0 %vm1918_vm1, %v1917_v11 }
 0xadd   :  { %1657 = vmatprep.subr.mxu0 %v1917_v11 }
 0xade   :  { %1658 = vmatpush3.msra.mxu0 %v2008_v12 }
 0xadf   :  { %1659 = vmatprep.subr.mxu0 %v1917_v11 }
 0xae0   :  { %1660 = vmatpush3.msra.mxu0 %v2013_v14 }
 0xae1   :  { %1661 = vmatprep.subr.mxu0 %v1917_v11 }
 0xae2   :  { %1662 = vmatpush3.msra.mxu0 %v2020_v15  ;;  %v2177_v42 = vld [vmem:[#allocation3 + $0x18] sm:$0xff] }
 0xae3   :  { %1677 = vmatprep.subr.mxu0 %v1117_v27 }
 0xb9b   :  { %v750_v58 = vpop.f32.mrf.mxu0 }
 0xb9c   :  { %v751_v59 = vadd.f32 %v2062_v28, %v750_v58 }
 0xb9d   :  { %v1643_v60 = vpop.f32.mrf.mxu0 }
 0xb9e   :  { %764 = vrot.lane.b32.xlu0 %v751_v59, %s1919_s10  ;;  %v756_v62 = vadd.f32 %v755_v61, %v751_v59 }
 0xba0   :  { %v1487_v63 = vmul.f32 -1.442695, %v756_v62 }
 0xba2   :  { %1743 = vpow2.f32 %v1487_v63 }
 0xbaf   :  { %v1744_v0 = vpop.eup %1743 }
 0xbb0   :  { %v760_v1 = vadd.f32 1.0, %v1744_v0 }
 0xbb2   :  { %1745 = vrcp.f32 %v760_v1 }
 0xbbf   :  { %v1746_v2 = vpop.eup %1745 }
 0xbc0   :  { %v774_v8 = vsub.f32 1.0, %v1746_v2  ;;  %v780_v13 = vmul.f32 %v1746_v2, %v675_v56 }
 0xc10   :  { %v765_v3 = vpop.permute.xlu0 %764 }
 0xc11   :  { %v767_v4 = vmul.f32 %v1746_v2, %v765_v3 }
 0xc13   :  { %769 = vrot.lane.b32.xlu1 %v767_v4, %s1919_s10 }
 0xc85   :  { %v770_v5 = vpop.permute.xlu1 %769 }
 0xc86   :  { %v772_v6 = vadd.f32 %v770_v5, %v755_v61  ;;  %v1073_v5 = vld [vmem:[#allocation2 + $0x38] sm:$0xff] }
 0xc88   :  { %1747 = vtanh.f32 %v772_v6 }
 0xc95   :  { %v1748_v7 = vpop.eup %1747 }
 0xc96   :  { %776 = vrot.lane.b32.xlu0 %v1748_v7, %s1920_s4 }
 0xd08   :  { %v777_v9 = vpop.permute.xlu0 %776 }
 0xd09   :  { %v779_v17 = vmul.f32 %v777_v9, %v774_v8 }
 0xd0b   :  { %v781_v16 = vadd.f32 %v780_v13, %v779_v17 }
 0xd0d   :  { %783 = vrot.lane.b32.xlu1 %v781_v16, %s1920_s4 }
 0xd7f   :  { %v784_v18 = vpop.permute.xlu1 %783 }
 0xd80   :  { %787 = vst.msk [vmem:[#allocation3 + $0x20] sm:$0xff] %vm109_vm0, %v784_v18  ;;  %1653 = vmatmul.mubr.msk.f32.vlgmr.msra.gmra.mxu1 %vm109_vm0, %v784_v18 }
 0xd81   :  { %1667 = vmatpush3.msra.mxu1 %v2002_v10  ;;  %1674 = vmatprep.mubr.msk.f32.mxu1 %vm1918_vm1, %v1917_v11  ;;  %v861_v10 = vld [vmem:[#allocation2 + $0x28] sm:$0xff] }
 0xd82   :  { %1668 = vmatprep.subr.mxu1 %v1917_v11 }
 0xd83   :  { %1669 = vmatpush3.msra.mxu1 %v2008_v12 }
 0xd84   :  { %1670 = vmatprep.subr.mxu1 %v1917_v11 }
 0xd85   :  { %1671 = vmatpush3.msra.mxu1 %v2013_v14 }
 0xd86   :  { %1672 = vmatprep.subr.mxu1 %v1917_v11 }
 0xd87   :  { %1673 = vmatpush3.msra.mxu1 %v2020_v15  ;;  %v2181_v43 = vld [vmem:[#allocation3 + $0x20] sm:$0xff] }
 0xe40   :  { %v856_v19 = vpop.f32.mrf.mxu1 }
 0xe41   :  { %v857_v20 = vadd.f32 %v2062_v28, %v856_v19 }
 0xe42   :  { %v1654_v21 = vpop.f32.mrf.mxu1 }
 0xe43   :  { %870 = vrot.lane.b32.xlu0 %v857_v20, %s1919_s10  ;;  %v862_v22 = vadd.f32 %v861_v10, %v857_v20 }
 0xe45   :  { %v1489_v23 = vmul.f32 -1.442695, %v862_v22  ;;  %v1494_v22 = vld [vmem:[%s2267_s6] ss:$0 sm:$0xff]  ;;  %s1922_s6 = smov [#allocation13]  }
 0xe47   :  { %1749 = vpow2.f32 %v1489_v23 }
 0xe54   :  { %v1750_v24 = vpop.eup %1749 }
 0xe55   :  { %v866_v12 = vadd.f32 1.0, %v1750_v24 }
 0xe57   :  { %1751 = vrcp.f32 %v866_v12 }
 0xe64   :  { %v1752_v25 = vpop.eup %1751 }
 0xe65   :  { %v880_v30 = vsub.f32 1.0, %v1752_v25  ;;  %v886_v32 = vmul.f32 %v1752_v25, %v781_v16 }
 0xeb5   :  { %v871_v26 = vpop.permute.xlu0 %870 }
 0xeb6   :  { %v873_v14 = vmul.f32 %v1752_v25, %v871_v26 }
 0xeb8   :  { %875 = vrot.lane.b32.xlu1 %v873_v14, %s1919_s10 }
 0xf2a   :  { %v876_v11 = vpop.permute.xlu1 %875 }
 0xf2b   :  { %v878_v15 = vadd.f32 %v876_v11, %v861_v10 }
 0xf2d   :  { %1753 = vtanh.f32 %v878_v15  ;;  %v1503_v15 = vld [vmem:[%s2268_s7] ss:$0 sm:$0xff]  ;;  %s1458_s7 = sshll.u32 %s1922_s6, 4  ;;  %s1459_s7 = int_to_ptr.vmem [resolvable:$true] %s1458_s7 }
 0xf2e   :  { %s1883_s15 = scalar_lea.vmem %s1459_s7, 128  ;;  %p1888_p7 = scmp.lt.s32.totalorder %s1459_s7, %s1459_s7 }
 0xf2f   :  { %p1884_p6 = scmp.ne.s32.totalorder %s1459_s7, %s1883_s15  ;;  %p1889_p8 = scmp.lt.s32.totalorder %s1883_s15, %s1883_s15 }
 0xf31   :  { %p1890_p9 = por %p1889_p8, %p1888_p7 }
 0xf33   :  { %p1891_p10 = pnand %p1890_p9, %p1884_p6 }
 0xf3a   :  { %v1754_v29 = vpop.eup %1753 }
 0xf3b   :  { %882 = vrot.lane.b32.xlu0 %v1754_v29, %s1920_s4 }
 0xfad   :  { %v883_v31 = vpop.permute.xlu0 %882 }
 0xfae   :  { %v885_v33 = vmul.f32 %v883_v31, %v880_v30 }
 0xfb0   :  { %v887_v34 = vadd.f32 %v886_v32, %v885_v33 }
 0xfb2   :  { %889 = vrot.lane.b32.xlu1 %v887_v34, %s1920_s4 }
0x1024   :  { %v890_v35 = vpop.permute.xlu1 %889 }
0x1025   :  { %893 = vst.msk [vmem:[#allocation3 + $0x28] sm:$0xff] %vm109_vm0, %v890_v35  ;;  %1664 = vmatmul.mubr.msk.f32.vlgmr.msra.gmra.mxu0 %vm109_vm0, %v890_v35 }
0x1026   :  { %1678 = vmatpush3.msra.mxu0 %v1117_v27  ;;  %1685 = vmatprep.mubr.msk.f32.mxu0 %vm109_vm0, %v2165_v37 }
0x1027   :  { %1679 = vmatprep.subr.mxu0 %v1116_v36 }
0x1028   :  { %1680 = vmatpush3.msra.mxu0 %v1116_v36 }
0x1029   :  { %1681 = vmatprep.subr.mxu0 %v1115_v38 }
0x102a   :  { %1682 = vmatpush3.msra.mxu0 %v1115_v38 }
0x102b   :  { %1683 = vmatprep.subr.mxu0 %v1114_v39 }
0x102c   :  { %1684 = vmatpush3.msra.mxu0 %v1114_v39  ;;  %v2185_v44 = vld [vmem:[#allocation3 + $0x28] sm:$0xff] }
0x102d   :  { %1686 = vmatmul.mubr.msk.f32.vlgmr.msra.gmra.mxu0 %vm109_vm0, %v2169_v40 }
0x102e   :  { %1688 = vmatprep.mubr.msk.f32.mxu0 %vm109_vm0, %v2173_v41 }
0x1031   :  { %1689 = vmatmul.mubr.msk.f32.gmra.mxu0 %vm109_vm0, %v2177_v42 }
0x1032   :  { %1691 = vmatprep.mubr.msk.f32.mxu0 %vm109_vm0, %v2181_v43 }
0x1035   :  { %1692 = vmatmul.mubr.msk.f32.gmra.mxu0 %vm109_vm0, %v2185_v44 }
0x10e5   :  { %v962_v45 = vpop.f32.mrf.mxu0 }
0x10e6   :  { %v963_v46 = vadd.f32 %v2062_v28, %v962_v45 }
0x10e7   :  { %v1665_v47 = vpop.f32.mrf.mxu0 }
0x10e8   :  { %976 = vrot.lane.b32.xlu0 %v963_v46, %s1919_s10  ;;  %v968_v49 = vadd.f32 %v967_v48, %v963_v46 }
0x10ea   :  { %v1491_v50 = vmul.f32 -1.442695, %v968_v49 }
0x10ec   :  { %1755 = vpow2.f32 %v1491_v50 }
0x10ed   :  { %v1687_v20 = vpop.f32.mrf.mxu0 }
0x10ee   :  { %v1221_v50 = vadd.f32 %v1687_v20, %v1494_v22 }
0x10ef   :  { %v1215_v21 = vpop.f32.mrf.mxu0 }
0x10f0   :  { %v1216_v23 = vadd.f32 %v1494_v22, %v1215_v21 }
0x10f1   :  { %v1690_v10 = vpop.f32.mrf.mxu0 }
0x10f2   :  { %v1231_v25 = vadd.f32 %v1690_v10, %v1494_v22 }
0x10f3   :  { %v1225_v24 = vpop.f32.mrf.mxu0 }
0x10f4   :  { %v1226_v12 = vadd.f32 %v1494_v22, %v1225_v24 }
0x10f5   :  { %v1693_v26 = vpop.f32.mrf.mxu0 }
0x10f6   :  { %v1241_v14 = vadd.f32 %v1693_v26, %v1494_v22 }
0x10f9   :  { %v1756_v51 = vpop.eup %1755 }
0x10fa   :  { %v972_v52 = vadd.f32 1.0, %v1756_v51  ;;  %v1235_v51 = vpop.f32.mrf.mxu0 }
0x10fc   :  { %1757 = vrcp.f32 %v972_v52  ;;  %v1236_v52 = vadd.f32 %v1494_v22, %v1235_v51 }
0x1109   :  { %v1758_v53 = vpop.eup %1757 }
0x110a   :  { %v986_v59 = vsub.f32 1.0, %v1758_v53  ;;  %v992_v61 = vmul.f32 %v1758_v53, %v887_v34 }
0x115a   :  { %v977_v54 = vpop.permute.xlu0 %976 }
0x115b   :  { %v979_v55 = vmul.f32 %v1758_v53, %v977_v54 }
0x115d   :  { %981 = vrot.lane.b32.xlu1 %v979_v55, %s1919_s10 }
0x11cf   :  { %v982_v56 = vpop.permute.xlu1 %981 }
0x11d0   :  { %v984_v57 = vadd.f32 %v982_v56, %v967_v48 }
0x11d2   :  { %1759 = vtanh.f32 %v984_v57 }
0x11df   :  { %v1760_v58 = vpop.eup %1759 }
0x11e0   :  { %988 = vrot.lane.b32.xlu0 %v1760_v58, %s1920_s4 }
0x1252   :  { %v989_v60 = vpop.permute.xlu0 %988 }
0x1253   :  { %v991_v62 = vmul.f32 %v989_v60, %v986_v59 }
0x1255   :  { %v993_v63 = vadd.f32 %v992_v61, %v991_v62 }
0x1257   :  { %995 = vrot.lane.b32.xlu1 %v993_v63, %s1920_s4 }
0x12c9   :  { %v996_v0 = vpop.permute.xlu1 %995 }
0x12ca   :  { %999 = vst.msk [vmem:[#allocation3 + $0x30] sm:$0xff] %vm109_vm0, %v996_v0  ;;  %1675 = vmatmul.mubr.msk.f32.vlgmr.msra.gmra.mxu1 %vm109_vm0, %v996_v0 }
0x12d1   :  { %v2196_v1 = vld [vmem:[#allocation3 + $0x30] sm:$0xff] }
0x12d2   :  { %1694 = vmatprep.mubr.msk.f32.mxu0 %vm109_vm0, %v2196_v1 }
0x138a   :  { %v1068_v2 = vpop.f32.mrf.mxu1 }
0x138b   :  { %v1069_v3 = vadd.f32 %v2062_v28, %v1068_v2 }
0x138c   :  { %v1676_v4 = vpop.f32.mrf.mxu1 }
0x138d   :  { %1082 = vrot.lane.b32.xlu0 %v1069_v3, %s1919_s10  ;;  %v1074_v6 = vadd.f32 %v1073_v5, %v1069_v3 }
0x138f   :  { %v1493_v7 = vmul.f32 -1.442695, %v1074_v6 }
0x1391   :  { %1761 = vpow2.f32 %v1493_v7 }
0x139e   :  { %v1762_v8 = vpop.eup %1761 }
0x139f   :  { %v1078_v9 = vadd.f32 1.0, %v1762_v8  ;;  %v1921_v8 = vmov 0  }
0x13a0   :  { %1718 = vset.pattern.permute.xlu0 %v1921_v8  ;;  %1717 = vset.pattern.permute.xlu1 %v1921_v8 }
0x13a1   :  { %1763 = vrcp.f32 %v1078_v9 }
0x13ae   :  { %v1764_v13 = vpop.eup %1763 }
0x13af   :  { %v1092_v45 = vsub.f32 1.0, %v1764_v13  ;;  %v1098_v47 = vmul.f32 %v1764_v13, %v993_v63 }
0x13ff   :  { %v1083_v17 = vpop.permute.xlu0 %1082 }
0x1400   :  { %v1085_v16 = vmul.f32 %v1764_v13, %v1083_v17 }
0x1402   :  { %1087 = vrot.lane.b32.xlu1 %v1085_v16, %s1919_s10 }
0x1474   :  { %v1088_v18 = vpop.permute.xlu1 %1087 }
0x1475   :  { %v1090_v19 = vadd.f32 %v1088_v18, %v1073_v5 }
0x1477   :  { %1765 = vtanh.f32 %v1090_v19  ;;  %v1504_v19 = vld [vmem:[#allocation4] ss:$0 sm:$0xff] }
0x1478   :  { %1767 = vtanh.f32 %v1216_v23 }
0x1479   :  { %1769 = vtanh.f32 %v1226_v12 }
0x147a   :  { %1771 = vtanh.f32 %v1231_v25 }
0x147b   :  { %1773 = vtanh.f32 %v1241_v14 }
0x147c   :  { %1775 = vtanh.f32 %v1221_v50 }
0x147d   :  { %1777 = vtanh.f32 %v1236_v52 }
0x1484   :  { %v1766_v28 = vpop.eup %1765 }
0x1485   :  { %1094 = vrot.lane.b32.xlu0 %v1766_v28, %s1920_s4  ;;  %v1768_v11 = vpop.eup %1767 }
0x1486   :  { %v1269_v27 = vmul.f32 %v1768_v11, %v1503_v15  ;;  %v1770_v29 = vpop.eup %1769 }
0x1487   :  { %v1271_v31 = vmul.f32 %v1770_v29, %v1503_v15  ;;  %v1772_v32 = vpop.eup %1771 }
0x1488   :  { %v1278_v30 = vsel %vm1277_vm3, %v1269_v27, 0.0  ;;  %v1272_v34 = vmul.f32 %v1772_v32, %v1503_v15  ;;  %v1774_v35 = vpop.eup %1773 }
0x1489   :  { %v1284_v33 = vsel %vm1277_vm3, %v1271_v31, 0.0  ;;  %v1274_v38 = vmul.f32 %v1774_v35, %v1503_v15  ;;  %v1776_v53 = vpop.eup %1775 }
0x148a   :  { %v1287_v36 = vsel %vm1277_vm3, %v1272_v34, 0.0  ;;  %v1270_v54 = vmul.f32 %v1776_v53, %v1503_v15  ;;  %v1778_v55 = vpop.eup %1777 }
0x148b   :  { %v1293_v39 = vsel %vm1277_vm3, %v1274_v38, 0.0  ;;  %v1273_v57 = vmul.f32 %v1778_v55, %v1503_v15 }
0x148c   :  { %v1281_v56 = vsel %vm1277_vm3, %v1270_v54, 0.0 }
0x148d   :  { %v1290_v58 = vsel %vm1277_vm3, %v1273_v57, 0.0 }
0x14a4   :  { %1279 = vadd.xlane.f32.xlu0 %v1278_v30 }
0x14a8   :  { %1285 = vadd.xlane.f32.xlu0 %v1284_v33 }
0x14ac   :  { %1288 = vadd.xlane.f32.xlu0 %v1287_v36 }
0x14b0   :  { %1294 = vadd.xlane.f32.xlu0 %v1293_v39 }
0x14f7   :  { %v1095_v46 = vpop.permute.xlu0 %1094 }
0x14f8   :  { %v1097_v48 = vmul.f32 %v1095_v46, %v1092_v45 }
0x14fa   :  { %v1099_v49 = vadd.f32 %v1098_v47, %v1097_v48 }
0x14fc   :  { %1101 = vrot.lane.b32.xlu1 %v1099_v49, %s1920_s4 }
0x1520   :  { %1282 = vadd.xlane.f32.xlu1 %v1281_v56 }
0x1524   :  { %1291 = vadd.xlane.f32.xlu1 %v1290_v58 }
0x152d   :  { %v1280_v9 = vpop.xlane.xlu0 %1279 }
0x152e   :  { %v1309_v21 = vadd.f32 %v1504_v19, %v1280_v9 }
0x1530   :  { %v1318_v11 = vsel %vm1317_vm4, %v1309_v21, -inf }
0x1531   :  { %v1286_v13 = vpop.xlane.xlu0 %1285 }
0x1535   :  { %v1289_v16 = vpop.xlane.xlu0 %1288 }
0x1536   :  { %v1312_v24 = vadd.f32 %v1504_v19, %v1289_v16 }
0x1538   :  { %v1321_v32 = vsel %vm1317_vm4, %v1312_v24, -inf }
0x1539   :  { %v1295_v20 = vpop.xlane.xlu0 %1294 }
0x153a   :  { %v1314_v12 = vadd.f32 %v1504_v19, %v1295_v20 }
0x153c   :  { %v1324_v33 = vsel %vm1317_vm4, %v1314_v12, -inf }
0x156e   :  { %v1102_v59 = vpop.permute.xlu1 %1101 }
0x156f   :  { %1105 = vst.msk [vmem:[#allocation3 + $0x38] sm:$0xff] %vm109_vm0, %v1102_v59 }
0x1576   :  { %v2218_v60 = vld [vmem:[#allocation3 + $0x38] sm:$0xff] }
0x1577   :  { %1695 = vmatmul.mubr.msk.f32.gmra.mxu0 %vm109_vm0, %v2218_v60 }
0x15a9   :  { %v1283_v17 = vpop.xlane.xlu1 %1282 }
0x15aa   :  { %v1310_v10 = vadd.f32 %v1504_v19, %v1283_v17 }
0x15ad   :  { %v1292_v18 = vpop.xlane.xlu1 %1291 }
0x15ae   :  { %v1313_v28 = vadd.f32 %v1504_v19, %v1292_v18 }
0x15b0   :  { %v1322_v25 = vsel %vm1317_vm4, %v1313_v28, -inf }
0x15b1   :  { %v1323_v30 = vmax.f32 %v1318_v11, %v1322_v25 }
0x1637   :  { %v1696_v61 = vpop.f32.mrf.mxu0 }
0x1638   :  { %v1251_v62 = vadd.f32 %v1696_v61, %v1494_v22 }
0x1639   :  { %v1245_v63 = vpop.f32.mrf.mxu0 }
0x163a   :  { %1779 = vtanh.f32 %v1251_v62  ;;  %v1246_v0 = vadd.f32 %v1494_v22, %v1245_v63  ;;  %v1311_v22 = vadd.f32 %v1504_v19, %v1286_v13 }
0x163c   :  { %1781 = vtanh.f32 %v1246_v0  ;;  %v1320_v31 = vsel %vm1317_vm4, %v1311_v22, -inf }
0x1647   :  { %v1780_v2 = vpop.eup %1779 }
0x1648   :  { %v1276_v3 = vmul.f32 %v1780_v2, %v1503_v15 }
0x1649   :  { %v1782_v4 = vpop.eup %1781 }
0x164a   :  { %v1299_v5 = vsel %vm1277_vm3, %v1276_v3, 0.0  ;;  %v1275_v6 = vmul.f32 %v1782_v4, %v1503_v15  ;;  %v1319_v15 = vsel %vm1317_vm4, %v1310_v10, -inf }
0x164b   :  { %1300 = vadd.xlane.f32.xlu0 %v1299_v5  ;;  %v1325_v35 = vmax.f32 %v1319_v15, %v1324_v33 }
0x164c   :  { %v1296_v7 = vsel %vm1277_vm3, %v1275_v6, 0.0 }
0x164d   :  { %1297 = vadd.xlane.f32.xlu1 %v1296_v7  ;;  %v1330_v39 = vmax.f32 %v1323_v30, %v1325_v35 }
0x16d4   :  { %v1301_v23 = vpop.xlane.xlu0 %1300 }
0x16d5   :  { %v1316_v26 = vadd.f32 %v1504_v19, %v1301_v23 }
0x16d6   :  { %v1298_v14 = vpop.xlane.xlu1 %1297 }
0x16d7   :  { %v1328_v27 = vsel %vm1317_vm4, %v1316_v26, -inf  ;;  %v1315_v29 = vadd.f32 %v1504_v19, %v1298_v14 }
0x16d8   :  { %v1329_v36 = vmax.f32 %v1321_v32, %v1328_v27 }
0x16d9   :  { %v1326_v34 = vsel %vm1317_vm4, %v1315_v29, -inf }
0x16da   :  { %v1327_v38 = vmax.f32 %v1320_v31, %v1326_v34 }
0x16dc   :  { %v1331_v45 = vmax.f32 %v1327_v38, %v1329_v36 }
0x16de   :  { %v1332_v46 = vmax.f32 %v1330_v39, %v1331_v45 }
0x16e0   :  { %v1333_v47 = vsub.f32 %v1309_v21, %v1332_v46  ;;  %v1335_v48 = vsub.f32 %v1311_v22, %v1332_v46  ;;  %v1334_v50 = vsub.f32 %v1310_v10, %v1332_v46  ;;  %v1336_v51 = vsub.f32 %v1312_v24, %v1332_v46 }
0x16e1   :  { %v1337_v53 = vsub.f32 %v1313_v28, %v1332_v46  ;;  %v1338_v55 = vsub.f32 %v1314_v12, %v1332_v46  ;;  %v1339_v57 = vsub.f32 %v1315_v29, %v1332_v46  ;;  %v1340_v59 = vsub.f32 %v1316_v26, %v1332_v46 }
0x16e2   :  { %v1341_v49 = vmul.f32 1.442695, %v1333_v47  ;;  %v1345_v52 = vmul.f32 1.442695, %v1335_v48  ;;  %v1343_v54 = vmul.f32 1.442695, %v1334_v50 }
0x16e3   :  { %v1347_v56 = vmul.f32 1.442695, %v1336_v51  ;;  %v1349_v58 = vmul.f32 1.442695, %v1337_v53  ;;  %v1351_v61 = vmul.f32 1.442695, %v1338_v55 }
0x16e4   :  { %1783 = vpow2.f32 %v1341_v49  ;;  %v1353_v62 = vmul.f32 1.442695, %v1339_v57  ;;  %v1355_v63 = vmul.f32 1.442695, %v1340_v59 }
0x16e5   :  { %1785 = vpow2.f32 %v1345_v52 }
0x16e6   :  { %1787 = vpow2.f32 %v1343_v54 }
0x16e7   :  { %1789 = vpow2.f32 %v1347_v56 }
0x16e8   :  { %1791 = vpow2.f32 %v1349_v58 }
0x16e9   :  { %1793 = vpow2.f32 %v1351_v61 }
0x16ea   :  { %1795 = vpow2.f32 %v1353_v62 }
0x16eb   :  { %1797 = vpow2.f32 %v1355_v63 }
0x16f1   :  { %v1784_v0 = vpop.eup %1783 }
0x16f2   :  { %v1786_v2 = vpop.eup %1785  ;;  %v1357_v3 = vsel %vm1317_vm4, %v1784_v0, 0.0 }
0x16f3   :  { %v1788_v4 = vpop.eup %1787  ;;  %v1360_v8 = vsel %vm1317_vm4, %v1786_v2, 0.0 }
0x16f4   :  { %v1358_v5 = vsel %vm1317_vm4, %v1788_v4, 0.0  ;;  %v1790_v6 = vpop.eup %1789 }
0x16f5   :  { %v1359_v7 = vadd.f32 %v1358_v5, %v1357_v3  ;;  %v1792_v9 = vpop.eup %1791  ;;  %v1362_v17 = vsel %vm1317_vm4, %v1790_v6, 0.0 }
0x16f6   :  { %v1794_v16 = vpop.eup %1793  ;;  %v1364_v19 = vsel %vm1317_vm4, %v1792_v9, 0.0 }
0x16f7   :  { %v1361_v13 = vadd.f32 %v1360_v8, %v1359_v7  ;;  %v1796_v20 = vpop.eup %1795  ;;  %v1366_v21 = vsel %vm1317_vm4, %v1794_v16, 0.0 }
0x16f8   :  { %v1798_v10 = vpop.eup %1797  ;;  %v1368_v23 = vsel %vm1317_vm4, %v1796_v20, 0.0 }
0x16f9   :  { %v1363_v18 = vadd.f32 %v1362_v17, %v1361_v13  ;;  %v1370_v12 = vsel %vm1317_vm4, %v1798_v10, 0.0 }
0x16fb   :  { %v1365_v28 = vadd.f32 %v1364_v19, %v1363_v18 }
0x16fd   :  { %v1367_v22 = vadd.f32 %v1366_v21, %v1365_v28 }
0x16ff   :  { %v1369_v24 = vadd.f32 %v1368_v23, %v1367_v22 }
0x1701   :  { %v1371_v25 = vadd.f32 %v1370_v12, %v1369_v24 }
0x1703   :  { %1799 = vrcp.f32 %v1371_v25 }
0x1710   :  { %v1800_v26 = vpop.eup %1799 }
0x1711   :  { %v1374_v14 = vmul.f32 %v1800_v26, %v1788_v4  ;;  %v1373_v11 = vmul.f32 %v1800_v26, %v1784_v0  ;;  %v1375_v15 = vmul.f32 %v1800_v26, %v1786_v2  ;;  %v1376_v27 = vmul.f32 %v1800_v26, %v1790_v6 }
0x1712   :  { %v1377_v29 = vmul.f32 %v1800_v26, %v1792_v9  ;;  %v1378_v30 = vmul.f32 %v1800_v26, %v1794_v16  ;;  %v1379_v31 = vmul.f32 %v1800_v26, %v1796_v20  ;;  %v1380_v32 = vmul.f32 %v1800_v26, %v1798_v10 }
0x1713   :  { %1388 = vperm.xlu0 %1718, %v1374_v14   ;;  %1383 = vperm.xlu1 %1717, %v1373_v11  }
0x1717   :  { %1393 = vperm.xlu1 %1717, %v1375_v15  }
0x171b   :  { %1398 = vperm.xlu1 %1717, %v1376_v27  }
0x171f   :  { %1403 = vperm.xlu1 %1717, %v1377_v29  }
0x1723   :  { %1408 = vperm.xlu1 %1717, %v1378_v30  }
0x1727   :  { %1413 = vperm.xlu1 %1717, %v1379_v31  }
0x172b   :  { %1418 = vperm.xlu1 %1717, %v1380_v32  }
0x178e   :  { %v1384_v33 = vpop.permute.xlu1 %1383  ;;  %v1389_v35 = vpop.permute.xlu0 %1388 }
0x178f   :  { %v1422_v38 = vmul.f32 %v1389_v35, %v2169_v40  ;;  %v1421_v39 = vmul.f32 %v1384_v33, %v2165_v37 }
0x1791   :  { %v1430_v47 = vsel %vm109_vm0, %v1422_v38, 0.0  ;;  %v1429_v48 = vsel %vm109_vm0, %v1421_v39, 0.0 }
0x1792   :  { %v1394_v34 = vpop.permute.xlu1 %1393  ;;  %v1431_v52 = vadd.f32 %v1430_v47, %v1429_v48 }
0x1793   :  { %v1423_v45 = vmul.f32 %v1394_v34, %v2173_v41 }
0x1795   :  { %v1432_v50 = vsel %vm109_vm0, %v1423_v45, 0.0 }
0x1796   :  { %v1399_v36 = vpop.permute.xlu1 %1398  ;;  %v1433_v37 = vadd.f32 %v1432_v50, %v1431_v52 }
0x1797   :  { %v1424_v49 = vmul.f32 %v1399_v36, %v2177_v42 }
0x1799   :  { %v1434_v54 = vsel %vm109_vm0, %v1424_v49, 0.0 }
0x179a   :  { %v1404_v46 = vpop.permute.xlu1 %1403  ;;  %v1435_v55 = vadd.f32 %v1434_v54, %v1433_v37 }
0x179b   :  { %v1425_v51 = vmul.f32 %v1404_v46, %v2181_v43 }
0x179d   :  { %v1436_v41 = vsel %vm109_vm0, %v1425_v51, 0.0 }
0x179e   :  { %v1409_v53 = vpop.permute.xlu1 %1408  ;;  %v1437_v42 = vadd.f32 %v1436_v41, %v1435_v55 }
0x179f   :  { %v1426_v40 = vmul.f32 %v1409_v53, %v2185_v44 }
0x17a1   :  { %v1438_v57 = vsel %vm109_vm0, %v1426_v40, 0.0 }
0x17a2   :  { %v1414_v56 = vpop.permute.xlu1 %1413  ;;  %v1439_v61 = vadd.f32 %v1438_v57, %v1437_v42 }
0x17a3   :  { %v1427_v58 = vmul.f32 %v1414_v56, %v2196_v1 }
0x17a5   :  { %v1440_v59 = vsel %vm109_vm0, %v1427_v58, 0.0 }
0x17a6   :  { %v1419_v43 = vpop.permute.xlu1 %1418  ;;  %v1441_v63 = vadd.f32 %v1440_v59, %v1439_v61 }
0x17a7   :  { %v1428_v62 = vmul.f32 %v1419_v43, %v2218_v60 }
0x17a9   :  { %v1442_v0 = vsel %vm109_vm0, %v1428_v62, 0.0 }
0x17aa   :  { %v1443_v44 = vadd.f32 %v1442_v0, %v1441_v63 }
0x17ac   :  { %v1444_v2 = vmul.f32 %v1443_v44, %v1443_v44 }
0x17ae   :  { %v1445_v3 = vsel %vm109_vm0, %v1444_v2, 0.0 }
0x17af   :  { %1446 = vadd.xlane.f32.xlu1 %v1445_v3 }
0x1838   :  { %v1447_v4 = vpop.xlane.xlu1 %1446 }
0x1839   :  { %v1448_v5 = vmax.f32 %v1447_v4, 1e-24 }
0x183b   :  { %1801 = vrsqrt.f32 %v1448_v5 }
0x1848   :  { %v1802_v1 = vpop.eup %1801 }
0x1849   :  { %v1450_v6 = vmul.f32 %v1802_v1, %v1443_v44 }
0x184b   :  { %1451 = vst.msk [vmem:[#allocation13] sm:$0xff] %vm109_vm0, %v1450_v6 }
0x184c   :  { %1894 = shalt.err (!%p1891_p10)
}
0x184d   :  { %1461 = dma.vmem_to_hbm [thread:$0]  %s1459_s7, 128, %s2270_s9, [#allocation7]  }
0x184e   :  { %1909 = dma.done.wait [#allocation7], 128  }
0x184f   :  { %1910 = vsyncadd [#allocation7], 4294967168 }
0x1850   :  { %1465 = vsyncpa [#allocation6], 1 }
0x1851   :  { %1466 = vsyncpa [#allocation9], 1 }
0x1852   :  { %1467 = vsyncpa [#allocation12], 1 }
0x1853   :  { %1468 = vsyncpa [#allocation7], 1 }

</bundles_post_ra>
